<compile_context>
chip_gen: v5e
topology: v5e:2x2
jax: 0.10.0
libtpu: 0.0.40
codegen_flags: <defaults>
</compile_context>

<pallas_src>
import math
import functools

import jax
import jax.numpy as jnp
from jax.experimental import pallas as pl
from jax.experimental.pallas import tpu as pltpu

INF = 1e10
EPS = 1e-6


def _layernorm(x, gamma, beta):
    # torch.std is UNBIASED (divides by D-1); eps is added to std.
    d = x.shape[-1]
    mean = jnp.mean(x, axis=-1, keepdims=True)
    var = jnp.sum((x - mean) ** 2, axis=-1, keepdims=True) * (1.0 / (d - 1))
    return gamma * (x - mean) / (jnp.sqrt(var) + EPS) + beta


def encoder_layer_kernel(x_ref, mask_ref,
                         wqkv_ref, bqkv_ref, wo_ref, bo_ref,
                         g1_ref, be1_ref, w1_ref, b1_ref, w2_ref, b2_ref,
                         g2_ref, be2_ref, out_ref,
                         *, n_heads, d_model):
    bt, seq, d = x_ref.shape          # (Bt, T, D) block
    m_rows = bt * seq
    dh = d // n_heads
    inv_scale = 1.0 / math.sqrt(d_model)   # Attention(d_key=d_model) -> sqrt(D)

    x_bf = x_ref[...].reshape(m_rows, d)        # (Bt*T, D) bf16, flat rows
    x_f32 = x_bf.astype(jnp.float32)            # residual / LayerNorm path

    def lin(v_bf, w_ref, b_ref):
        # Weights already [d_in, d_out] (pre-transposed, bf16); f32 accumulate.
        return (jnp.dot(v_bf, w_ref[...], preferred_element_type=jnp.float32)
                + b_ref[...])

    # ---- MultiHead2: fused Q/K/V projection, one (M, D) x (D, 3D) MXU pass.
    qkv = lin(x_bf, wqkv_ref, bqkv_ref).astype(jnp.bfloat16)    # (M, 3D)
    q = qkv[:, :d].reshape(bt, seq, d)          # lane-aligned 128-wide slices
    k = qkv[:, d:2 * d].reshape(bt, seq, d)
    v = qkv[:, 2 * d:].reshape(bt, seq, d)

    # Put heads into the einsum batch dimension: (H*Bt, T, dh), index h*Bt+b.
    def split_heads(a):
        return jnp.concatenate(
            [a[:, :, h * dh:(h + 1) * dh] for h in range(n_heads)], axis=0)

    qh, kh, vh = split_heads(q), split_heads(k), split_heads(v)

    mvals = mask_ref[...].astype(jnp.float32)   # (Bt, 1, T)  1=keep, 0=masked
    neg = (1.0 - mvals) * INF
    neg = jnp.concatenate([neg] * n_heads, axis=0)      # (H*Bt, 1, T)

    # Batched q @ k^T over all heads and batch rows at once (trans-B contract,
    # no transpose materialized).
    scores = jnp.einsum('bqd,bkd->bqk', qh, kh,
                        preferred_element_type=jnp.float32)     # (H*Bt, T, T)
    logits = (scores - neg) * inv_scale         # mask before scale (spec)
    logits = logits - jnp.max(logits, axis=-1, keepdims=True)
    p = jnp.exp(logits)
    probs = p * pl.reciprocal(jnp.sum(p, axis=-1, keepdims=True), approx=True)

    ctx = jnp.einsum('bqk,bkd->bqd', probs.astype(jnp.bfloat16), vh,
                     preferred_element_type=jnp.float32)        # (H*Bt, T, dh)

    # Merge heads back into one lane-dense (Bt, T, D) slab (single full-width
    # value, no per-head masked lane-slice stores, no VMEM scratch).
    ctx = jnp.concatenate(
        [ctx[h * bt:(h + 1) * bt] for h in range(n_heads)], axis=-1)
    attn = lin(ctx.reshape(m_rows, d).astype(jnp.bfloat16), wo_ref, bo_ref)

    # ---- ResidualBlock 1 : LayerNorm(x + attn) ----
    y = _layernorm(x_f32 + attn, g1_ref[...], be1_ref[...])

    # ---- FeedForward + ResidualBlock 2 ----
    h1 = jnp.maximum(lin(y.astype(jnp.bfloat16), w1_ref, b1_ref), 0.0)
    ff = lin(h1.astype(jnp.bfloat16), w2_ref, b2_ref)
    z = _layernorm(y + ff, g2_ref[...], be2_ref[...])

    # TODO(synk): dropout omitted (identity) — matches eval()-mode semantics.
    out_ref[...] = z.reshape(bt, seq, d).astype(out_ref.dtype)


def encoder_layer(x, mask, params, *, n_heads, block_b=None):
    """x: (B, T, D) float32, mask: (B, 1, T) float32 (1=keep, 0=mask)."""
    B, T, D = x.shape
    (wq, bq, wk, bk, wv, bv, wo, bo,
     g1, be1, w1, b1, w2, b2, g2, be2) = params

    # Block multiple batch elements per grid step (raise MXU row count and
    # amortize per-step overhead), but keep >= 2 evenly sized steps so v7x's
    # two TensorCores both get work under dimension_semantics=("parallel",).
    if block_b is None:
        target = max(1, min(max(B // 2, 1), pl.cdiv(256, T)))
        block_b = max(c for c in range(1, B + 1) if B % c == 0 and c <= target)

    # One-time wrapper-side prep: transpose to [d_in, d_out], cast bf16, and
    # fuse Q/K/V weights/biases into a single (D, 3D) / (1, 3D) operand.
    def prep(w):
        return jnp.transpose(w).astype(jnp.bfloat16)

    wqkvT = jnp.concatenate([prep(wq), prep(wk), prep(wv)], axis=1)
    bqkv = jnp.concatenate([bq, bk, bv], axis=1)
    woT, w1T, w2T = prep(wo), prep(w1), prep(w2)

    # Stream activations as bf16 (halves per-step HBM input traffic); the
    # kernel upcasts once for the residual / LayerNorm path.
    x_bf = x.astype(jnp.bfloat16)

    def full2d(a):
        # TODO(synk): at production d_model, single-buffer these grid-invariant
        # weight specs (pipeline_mode=pl.Buffered(1)) to halve weight VMEM.
        return pl.BlockSpec(a.shape, lambda b: (0, 0))

    kernel = functools.partial(encoder_layer_kernel,
                               n_heads=n_heads, d_model=D)

    # TODO(synk): for long sequences tile the attention over the query dim
    # (flash-style) and budget the resident (T,T) score tile against v7x's
    # 64 MiB VMEM (half of v5e/v6e).
    return pl.pallas_call(
        kernel,
        out_shape=jax.ShapeDtypeStruct((B, T, D), x.dtype),
        grid_spec=pltpu.PrefetchScalarGridSpec(
            num_scalar_prefetch=0,
            grid=(B // block_b,),
            in_specs=[
                pl.BlockSpec((block_b, T, D), lambda b: (b, 0, 0)),   # x
                pl.BlockSpec((block_b, 1, T), lambda b: (b, 0, 0)),   # mask
                full2d(wqkvT), full2d(bqkv),
                full2d(woT), full2d(bo),
                full2d(g1), full2d(be1),
                full2d(w1T), full2d(b1),
                full2d(w2T), full2d(b2),
                full2d(g2), full2d(be2),
            ],
            out_specs=pl.BlockSpec((block_b, T, D), lambda b: (b, 0, 0)),
        ),
        compiler_params=pltpu.CompilerParams(
            dimension_semantics=("parallel",),      # batch blocks independent
            vmem_limit_bytes=32 * 1024 * 1024),     # fits v7x's 64 MiB/TC
    )(x_bf, mask, wqkvT, bqkv, woT, bo, g1, be1, w1T, b1, w2T, b2, g2, be2)


# ----------------- pure-JAX f32 reference (PyTorch semantics) -----------------
def ref_encoder_layer(x, mask, params, *, n_heads):
    (wq, bq, wk, bk, wv, bv, wo, bo,
     g1, be1, w1, b1, w2, b2, g2, be2) = params
    B, T, D = x.shape
    dh = D // n_heads
    scale = math.sqrt(D)

    def ln(v, g, b):
        mean = jnp.mean(v, -1, keepdims=True)
        var = jnp.sum((v - mean) ** 2, -1, keepdims=True) / (D - 1)
        return g * (v - mean) / (jnp.sqrt(var) + EPS) + b

    q = x @ wq.T + bq
    k = x @ wk.T + bk
    v = x @ wv.T + bv
    q = q.reshape(B, T, n_heads, dh).transpose(0, 2, 1, 3)
    k = k.reshape(B, T, n_heads, dh).transpose(0, 2, 1, 3)
    v = v.reshape(B, T, n_heads, dh).transpose(0, 2, 1, 3)
    scores = q @ k.transpose(0, 1, 3, 2)                        # (B,N,T,T)
    scores = scores - (1.0 - mask[:, :, None, :]) * INF
    probs = jax.nn.softmax(scores / scale, axis=-1)
    o = (probs @ v).transpose(0, 2, 1, 3).reshape(B, T, D)
    o = o @ wo.T + bo
    y = ln(x + o, g1, be1)
    h = jnp.maximum(y @ w1.T + b1, 0.0)
    f = h @ w2.T + b2
    return ln(y + f, g2, be2)


def init_params(key, d_model, d_hidden):
    ks = jax.random.split(key, 6)

    def lin_init(k, d_out, d_in):
        stdv = 1.0 / math.sqrt(d_in)
        w = jax.random.uniform(k, (d_out, d_in), jnp.float32, -stdv, stdv)
        b = jnp.zeros((1, d_out), jnp.float32)
        return w, b

    wq, bq = lin_init(ks[0], d_model, d_model)
    wk, bk = lin_init(ks[1], d_model, d_model)
    wv, bv = lin_init(ks[2], d_model, d_model)
    wo, bo = lin_init(ks[3], d_model, d_model)
    w1, b1 = lin_init(ks[4], d_hidden, d_model)
    w2, b2 = lin_init(ks[5], d_model, d_hidden)
    g1 = jnp.ones((1, d_model), jnp.float32)
    be1 = jnp.zeros((1, d_model), jnp.float32)
    g2 = jnp.ones((1, d_model), jnp.float32)
    be2 = jnp.zeros((1, d_model), jnp.float32)
    return (wq, bq, wk, bk, wv, bv, wo, bo,
            g1, be1, w1, b1, w2, b2, g2, be2)


if __name__ == "__main__":
    # Small but lane/sublane-aligned demo shapes: T=8 (sublane), D=128 (lane),
    # d_hidden=256, 4 heads (dh=32).  B=8 with block_b=4 -> 2 "parallel" grid
    # steps of 32 flattened rows each.
    B, T, D, H, N_HEADS = 8, 8, 128, 256, 4

    key = jax.random.PRNGKey(0)
    kx, kp = jax.random.split(key)
    x = jax.random.normal(kx, (B, T, D), jnp.float32)

    # mask: 1 = keep, 0 = masked; a couple of examples mask trailing positions.
    mask = jnp.ones((B, 1, T), jnp.float32)
    mask = mask.at[1, 0, T - 2:].set(0.0)
    mask = mask.at[3, 0, T - 3:].set(0.0)

    params = init_params(kp, D, H)

    out = encoder_layer(x, mask, params, n_heads=N_HEADS)
    out = jax.block_until_ready(out)

    ref = ref_encoder_layer(x, mask, params, n_heads=N_HEADS)
    assert out.shape == (B, T, D)
    # Tolerance accounts for bf16 activation streaming + bf16 MXU inputs
    # (f32 accumulation) and the approx-reciprocal softmax; reference is f32.
    assert jnp.allclose(out, ref, atol=8e-2, rtol=3e-2), (
        float(jnp.max(jnp.abs(out - ref))))

    print("KERNEL_OK")
</pallas_src>

<mosaic_0001>
module attributes {stable_mosaic.version = 11 : i64} {
  func.func @encoder_layer_kernel(%arg0: i32, %arg1: memref<4x8x128xbf16, #tpu.memory_space<vmem>>, %arg2: memref<4x1x8xf32, #tpu.memory_space<vmem>>, %arg3: memref<128x384xbf16, #tpu.memory_space<vmem>>, %arg4: memref<1x384xf32, #tpu.memory_space<vmem>>, %arg5: memref<128x128xbf16, #tpu.memory_space<vmem>>, %arg6: memref<1x128xf32, #tpu.memory_space<vmem>>, %arg7: memref<1x128xf32, #tpu.memory_space<vmem>>, %arg8: memref<1x128xf32, #tpu.memory_space<vmem>>, %arg9: memref<128x256xbf16, #tpu.memory_space<vmem>>, %arg10: memref<1x256xf32, #tpu.memory_space<vmem>>, %arg11: memref<256x128xbf16, #tpu.memory_space<vmem>>, %arg12: memref<1x128xf32, #tpu.memory_space<vmem>>, %arg13: memref<1x128xf32, #tpu.memory_space<vmem>>, %arg14: memref<1x128xf32, #tpu.memory_space<vmem>>, %arg15: memref<4x8x128xf32, #tpu.memory_space<vmem>>) attributes {dimension_semantics = [#tpu.dimension_semantics<parallel>], iteration_bounds = array<i64: 2>, scalar_prefetch = 0 : i64, scratch_operands = 0 : i64, tpu.core_type = #tpu.core_type<tc>, window_params = [{transform_indices = @transform_0, window_bounds = array<i64: 4, 8, 128>}, {transform_indices = @transform_1, window_bounds = array<i64: 4, 1, 8>}, {pipeline_mode = #tpu.pipeline_mode<synchronous>, transform_indices = @transform_2, window_bounds = array<i64: 128, 384>}, {pipeline_mode = #tpu.pipeline_mode<synchronous>, transform_indices = @transform_3, window_bounds = array<i64: 1, 384>}, {pipeline_mode = #tpu.pipeline_mode<synchronous>, transform_indices = @transform_4, window_bounds = array<i64: 128, 128>}, {pipeline_mode = #tpu.pipeline_mode<synchronous>, transform_indices = @transform_5, window_bounds = array<i64: 1, 128>}, {pipeline_mode = #tpu.pipeline_mode<synchronous>, transform_indices = @transform_6, window_bounds = array<i64: 1, 128>}, {pipeline_mode = #tpu.pipeline_mode<synchronous>, transform_indices = @transform_7, window_bounds = array<i64: 1, 128>}, {pipeline_mode = #tpu.pipeline_mode<synchronous>, transform_indices = @transform_8, window_bounds = array<i64: 128, 256>}, {pipeline_mode = #tpu.pipeline_mode<synchronous>, transform_indices = @transform_9, window_bounds = array<i64: 1, 256>}, {pipeline_mode = #tpu.pipeline_mode<synchronous>, transform_indices = @transform_10, window_bounds = array<i64: 256, 128>}, {pipeline_mode = #tpu.pipeline_mode<synchronous>, transform_indices = @transform_11, window_bounds = array<i64: 1, 128>}, {pipeline_mode = #tpu.pipeline_mode<synchronous>, transform_indices = @transform_12, window_bounds = array<i64: 1, 128>}, {pipeline_mode = #tpu.pipeline_mode<synchronous>, transform_indices = @transform_13, window_bounds = array<i64: 1, 128>}, {transform_indices = @transform_14, window_bounds = array<i64: 4, 8, 128>}]} {
    %c0 = arith.constant 0 : index
    %c0_0 = arith.constant 0 : index
    %c0_1 = arith.constant 0 : index
    %0 = vector.load %arg1[%c0, %c0_0, %c0_1] : memref<4x8x128xbf16, #tpu.memory_space<vmem>>, vector<4x8x128xbf16>
    %1 = vector.shape_cast %0 : vector<4x8x128xbf16> to vector<32x128xbf16>
    %2 = arith.extf %1 : vector<32x128xbf16> to vector<32x128xf32>
    %c0_2 = arith.constant 0 : index
    %c0_3 = arith.constant 0 : index
    %3 = vector.load %arg3[%c0_2, %c0_3] : memref<128x384xbf16, #tpu.memory_space<vmem>>, vector<128x384xbf16>
    %cst = arith.constant dense<0.000000e+00> : vector<32x384xf32>
    %4 = tpu.matmul %1, %3, %cst {dimension_numbers = #tpu.dot_dimension_numbers<[1], [0], [0], [1], [0, 0, 1, 1], [], []>} : vector<32x128xbf16>, vector<128x384xbf16>, vector<32x384xf32> -> vector<32x384xf32>
    %c0_4 = arith.constant 0 : index
    %c0_5 = arith.constant 0 : index
    %5 = vector.load %arg4[%c0_4, %c0_5] : memref<1x384xf32, #tpu.memory_space<vmem>>, vector<1x384xf32>
    %6 = vector.broadcast %5 : vector<1x384xf32> to vector<32x384xf32>
    %7 = arith.addf %4, %6 : vector<32x384xf32>
    %8 = arith.truncf %7 : vector<32x384xf32> to vector<32x384xbf16>
    %9 = vector.extract_strided_slice %8 {offsets = [0, 0], sizes = [32, 128], strides = [1, 1]} : vector<32x384xbf16> to vector<32x128xbf16>
    %10 = vector.shape_cast %9 : vector<32x128xbf16> to vector<4x8x128xbf16>
    %11 = vector.extract_strided_slice %8 {offsets = [0, 128], sizes = [32, 128], strides = [1, 1]} : vector<32x384xbf16> to vector<32x128xbf16>
    %12 = vector.shape_cast %11 : vector<32x128xbf16> to vector<4x8x128xbf16>
    %13 = vector.extract_strided_slice %8 {offsets = [0, 256], sizes = [32, 128], strides = [1, 1]} : vector<32x384xbf16> to vector<32x128xbf16>
    %14 = vector.shape_cast %13 : vector<32x128xbf16> to vector<4x8x128xbf16>
    %15 = vector.extract_strided_slice %10 {offsets = [0, 0, 0], sizes = [4, 8, 32], strides = [1, 1, 1]} : vector<4x8x128xbf16> to vector<4x8x32xbf16>
    %16 = vector.extract_strided_slice %10 {offsets = [0, 0, 32], sizes = [4, 8, 32], strides = [1, 1, 1]} : vector<4x8x128xbf16> to vector<4x8x32xbf16>
    %17 = vector.extract_strided_slice %10 {offsets = [0, 0, 64], sizes = [4, 8, 32], strides = [1, 1, 1]} : vector<4x8x128xbf16> to vector<4x8x32xbf16>
    %18 = vector.extract_strided_slice %10 {offsets = [0, 0, 96], sizes = [4, 8, 32], strides = [1, 1, 1]} : vector<4x8x128xbf16> to vector<4x8x32xbf16>
    %19 = tpu.concatenate %15, %16, %17, %18 in 0 : vector<4x8x32xbf16>, vector<4x8x32xbf16>, vector<4x8x32xbf16>, vector<4x8x32xbf16> -> vector<16x8x32xbf16>
    %20 = vector.extract_strided_slice %12 {offsets = [0, 0, 0], sizes = [4, 8, 32], strides = [1, 1, 1]} : vector<4x8x128xbf16> to vector<4x8x32xbf16>
    %21 = vector.extract_strided_slice %12 {offsets = [0, 0, 32], sizes = [4, 8, 32], strides = [1, 1, 1]} : vector<4x8x128xbf16> to vector<4x8x32xbf16>
    %22 = vector.extract_strided_slice %12 {offsets = [0, 0, 64], sizes = [4, 8, 32], strides = [1, 1, 1]} : vector<4x8x128xbf16> to vector<4x8x32xbf16>
    %23 = vector.extract_strided_slice %12 {offsets = [0, 0, 96], sizes = [4, 8, 32], strides = [1, 1, 1]} : vector<4x8x128xbf16> to vector<4x8x32xbf16>
    %24 = tpu.concatenate %20, %21, %22, %23 in 0 : vector<4x8x32xbf16>, vector<4x8x32xbf16>, vector<4x8x32xbf16>, vector<4x8x32xbf16> -> vector<16x8x32xbf16>
    %25 = vector.extract_strided_slice %14 {offsets = [0, 0, 0], sizes = [4, 8, 32], strides = [1, 1, 1]} : vector<4x8x128xbf16> to vector<4x8x32xbf16>
    %26 = vector.extract_strided_slice %14 {offsets = [0, 0, 32], sizes = [4, 8, 32], strides = [1, 1, 1]} : vector<4x8x128xbf16> to vector<4x8x32xbf16>
    %27 = vector.extract_strided_slice %14 {offsets = [0, 0, 64], sizes = [4, 8, 32], strides = [1, 1, 1]} : vector<4x8x128xbf16> to vector<4x8x32xbf16>
    %28 = vector.extract_strided_slice %14 {offsets = [0, 0, 96], sizes = [4, 8, 32], strides = [1, 1, 1]} : vector<4x8x128xbf16> to vector<4x8x32xbf16>
    %29 = tpu.concatenate %25, %26, %27, %28 in 0 : vector<4x8x32xbf16>, vector<4x8x32xbf16>, vector<4x8x32xbf16>, vector<4x8x32xbf16> -> vector<16x8x32xbf16>
    %c0_6 = arith.constant 0 : index
    %c0_7 = arith.constant 0 : index
    %c0_8 = arith.constant 0 : index
    %30 = vector.load %arg2[%c0_6, %c0_7, %c0_8] : memref<4x1x8xf32, #tpu.memory_space<vmem>>, vector<4x1x8xf32>
    %cst_9 = arith.constant 1.000000e+00 : f32
    %31 = vector.broadcast %cst_9 : f32 to vector<4x1x8xf32>
    %32 = arith.subf %31, %30 : vector<4x1x8xf32>
    %cst_10 = arith.constant 1.000000e+10 : f32
    %33 = vector.broadcast %cst_10 : f32 to vector<4x1x8xf32>
    %34 = arith.mulf %32, %33 : vector<4x1x8xf32>
    %35 = tpu.concatenate %34, %34, %34, %34 in 0 : vector<4x1x8xf32>, vector<4x1x8xf32>, vector<4x1x8xf32>, vector<4x1x8xf32> -> vector<16x1x8xf32>
    "tpu.trace_start"() <{level = 10 : i32, message = "bqd,bkd->bqk"}> : () -> ()
    %cst_11 = arith.constant dense<0.000000e+00> : vector<16x8x8xf32>
    %36 = tpu.matmul %19, %24, %cst_11 {dimension_numbers = #tpu.dot_dimension_numbers<[2], [2], [1], [1], [0, 0, 0, 1, 1, 1], [0], [0]>} : vector<16x8x32xbf16>, vector<16x8x32xbf16>, vector<16x8x8xf32> -> vector<16x8x8xf32>
    "tpu.trace_stop"() : () -> ()
    %37 = vector.broadcast %35 : vector<16x1x8xf32> to vector<16x8x8xf32>
    %38 = arith.subf %36, %37 : vector<16x8x8xf32>
    %cst_12 = arith.constant 0.0883883461 : f32
    %39 = vector.broadcast %cst_12 : f32 to vector<16x8x8xf32>
    %40 = arith.mulf %38, %39 : vector<16x8x8xf32>
    %cst_13 = arith.constant dense<0xFF800000> : vector<16x8xf32>
    %41 = vector.multi_reduction <maximumf>, %40, %cst_13 [2] : vector<16x8x8xf32> to vector<16x8xf32>
    %42 = vector.shape_cast %41 : vector<16x8xf32> to vector<16x8x1xf32>
    %43 = vector.broadcast %42 : vector<16x8x1xf32> to vector<16x8x8xf32>
    %44 = arith.subf %40, %43 : vector<16x8x8xf32>
    %45 = math.exp %44 : vector<16x8x8xf32>
    %cst_14 = arith.constant dense<0.000000e+00> : vector<16x8xf32>
    %46 = vector.multi_reduction <add>, %45, %cst_14 [2] : vector<16x8x8xf32> to vector<16x8xf32>
    %47 = vector.shape_cast %46 : vector<16x8xf32> to vector<16x8x1xf32>
    %48 = tpu.reciprocal %47 {approx = true} : vector<16x8x1xf32> -> vector<16x8x1xf32>
    %49 = vector.broadcast %48 : vector<16x8x1xf32> to vector<16x8x8xf32>
    %50 = arith.mulf %45, %49 : vector<16x8x8xf32>
    %51 = arith.truncf %50 : vector<16x8x8xf32> to vector<16x8x8xbf16>
    "tpu.trace_start"() <{level = 10 : i32, message = "bqk,bkd->bqd"}> : () -> ()
    %cst_15 = arith.constant dense<0.000000e+00> : vector<16x8x32xf32>
    %52 = tpu.matmul %51, %29, %cst_15 {dimension_numbers = #tpu.dot_dimension_numbers<[2], [1], [1], [2], [0, 0, 0, 1, 1, 2], [0], [0]>} : vector<16x8x8xbf16>, vector<16x8x32xbf16>, vector<16x8x32xf32> -> vector<16x8x32xf32>
    "tpu.trace_stop"() : () -> ()
    %53 = vector.extract_strided_slice %52 {offsets = [0, 0, 0], sizes = [4, 8, 32], strides = [1, 1, 1]} : vector<16x8x32xf32> to vector<4x8x32xf32>
    %54 = vector.extract_strided_slice %52 {offsets = [4, 0, 0], sizes = [4, 8, 32], strides = [1, 1, 1]} : vector<16x8x32xf32> to vector<4x8x32xf32>
    %55 = vector.extract_strided_slice %52 {offsets = [8, 0, 0], sizes = [4, 8, 32], strides = [1, 1, 1]} : vector<16x8x32xf32> to vector<4x8x32xf32>
    %56 = vector.extract_strided_slice %52 {offsets = [12, 0, 0], sizes = [4, 8, 32], strides = [1, 1, 1]} : vector<16x8x32xf32> to vector<4x8x32xf32>
    %57 = tpu.concatenate %53, %54, %55, %56 in 2 : vector<4x8x32xf32>, vector<4x8x32xf32>, vector<4x8x32xf32>, vector<4x8x32xf32> -> vector<4x8x128xf32>
    %58 = vector.shape_cast %57 : vector<4x8x128xf32> to vector<32x128xf32>
    %59 = arith.truncf %58 : vector<32x128xf32> to vector<32x128xbf16>
    %c0_16 = arith.constant 0 : index
    %c0_17 = arith.constant 0 : index
    %60 = vector.load %arg5[%c0_16, %c0_17] : memref<128x128xbf16, #tpu.memory_space<vmem>>, vector<128x128xbf16>
    %cst_18 = arith.constant dense<0.000000e+00> : vector<32x128xf32>
    %61 = tpu.matmul %59, %60, %cst_18 {dimension_numbers = #tpu.dot_dimension_numbers<[1], [0], [0], [1], [0, 0, 1, 1], [], []>} : vector<32x128xbf16>, vector<128x128xbf16>, vector<32x128xf32> -> vector<32x128xf32>
    %c0_19 = arith.constant 0 : index
    %c0_20 = arith.constant 0 : index
    %62 = vector.load %arg6[%c0_19, %c0_20] : memref<1x128xf32, #tpu.memory_space<vmem>>, vector<1x128xf32>
    %63 = vector.broadcast %62 : vector<1x128xf32> to vector<32x128xf32>
    %64 = arith.addf %61, %63 : vector<32x128xf32>
    %65 = arith.addf %2, %64 : vector<32x128xf32>
    %c0_21 = arith.constant 0 : index
    %c0_22 = arith.constant 0 : index
    %66 = vector.load %arg7[%c0_21, %c0_22] : memref<1x128xf32, #tpu.memory_space<vmem>>, vector<1x128xf32>
    %c0_23 = arith.constant 0 : index
    %c0_24 = arith.constant 0 : index
    %67 = vector.load %arg8[%c0_23, %c0_24] : memref<1x128xf32, #tpu.memory_space<vmem>>, vector<1x128xf32>
    %cst_25 = arith.constant dense<0.000000e+00> : vector<32xf32>
    %68 = vector.multi_reduction <add>, %65, %cst_25 [1] : vector<32x128xf32> to vector<32xf32>
    %69 = vector.shape_cast %68 : vector<32xf32> to vector<32x1xf32>
    %cst_26 = arith.constant 1.280000e+02 : f32
    %70 = vector.broadcast %cst_26 : f32 to vector<32x1xf32>
    %71 = arith.divf %69, %70 : vector<32x1xf32>
    %72 = vector.broadcast %71 : vector<32x1xf32> to vector<32x128xf32>
    %73 = arith.subf %65, %72 : vector<32x128xf32>
    %74 = arith.mulf %73, %73 : vector<32x128xf32>
    %cst_27 = arith.constant dense<0.000000e+00> : vector<32xf32>
    %75 = vector.multi_reduction <add>, %74, %cst_27 [1] : vector<32x128xf32> to vector<32xf32>
    %76 = vector.shape_cast %75 : vector<32xf32> to vector<32x1xf32>
    %cst_28 = arith.constant 0.00787401571 : f32
    %77 = vector.broadcast %cst_28 : f32 to vector<32x1xf32>
    %78 = arith.mulf %76, %77 : vector<32x1xf32>
    %79 = vector.broadcast %71 : vector<32x1xf32> to vector<32x128xf32>
    %80 = arith.subf %65, %79 : vector<32x128xf32>
    %81 = vector.broadcast %66 : vector<1x128xf32> to vector<32x128xf32>
    %82 = arith.mulf %81, %80 : vector<32x128xf32>
    %83 = math.sqrt %78 : vector<32x1xf32>
    %cst_29 = arith.constant 9.99999997E-7 : f32
    %84 = vector.broadcast %cst_29 : f32 to vector<32x1xf32>
    %85 = arith.addf %83, %84 : vector<32x1xf32>
    %86 = vector.broadcast %85 : vector<32x1xf32> to vector<32x128xf32>
    %87 = arith.divf %82, %86 : vector<32x128xf32>
    %88 = vector.broadcast %67 : vector<1x128xf32> to vector<32x128xf32>
    %89 = arith.addf %87, %88 : vector<32x128xf32>
    %90 = arith.truncf %89 : vector<32x128xf32> to vector<32x128xbf16>
    %c0_30 = arith.constant 0 : index
    %c0_31 = arith.constant 0 : index
    %91 = vector.load %arg9[%c0_30, %c0_31] : memref<128x256xbf16, #tpu.memory_space<vmem>>, vector<128x256xbf16>
    %cst_32 = arith.constant dense<0.000000e+00> : vector<32x256xf32>
    %92 = tpu.matmul %90, %91, %cst_32 {dimension_numbers = #tpu.dot_dimension_numbers<[1], [0], [0], [1], [0, 0, 1, 1], [], []>} : vector<32x128xbf16>, vector<128x256xbf16>, vector<32x256xf32> -> vector<32x256xf32>
    %c0_33 = arith.constant 0 : index
    %c0_34 = arith.constant 0 : index
    %93 = vector.load %arg10[%c0_33, %c0_34] : memref<1x256xf32, #tpu.memory_space<vmem>>, vector<1x256xf32>
    %94 = vector.broadcast %93 : vector<1x256xf32> to vector<32x256xf32>
    %95 = arith.addf %92, %94 : vector<32x256xf32>
    %cst_35 = arith.constant 0.000000e+00 : f32
    %96 = vector.broadcast %cst_35 : f32 to vector<32x256xf32>
    %97 = arith.maximumf %95, %96 : vector<32x256xf32>
    %98 = arith.truncf %97 : vector<32x256xf32> to vector<32x256xbf16>
    %c0_36 = arith.constant 0 : index
    %c0_37 = arith.constant 0 : index
    %99 = vector.load %arg11[%c0_36, %c0_37] : memref<256x128xbf16, #tpu.memory_space<vmem>>, vector<256x128xbf16>
    %cst_38 = arith.constant dense<0.000000e+00> : vector<32x128xf32>
    %100 = tpu.matmul %98, %99, %cst_38 {dimension_numbers = #tpu.dot_dimension_numbers<[1], [0], [0], [1], [0, 0, 1, 1], [], []>} : vector<32x256xbf16>, vector<256x128xbf16>, vector<32x128xf32> -> vector<32x128xf32>
    %c0_39 = arith.constant 0 : index
    %c0_40 = arith.constant 0 : index
    %101 = vector.load %arg12[%c0_39, %c0_40] : memref<1x128xf32, #tpu.memory_space<vmem>>, vector<1x128xf32>
    %102 = vector.broadcast %101 : vector<1x128xf32> to vector<32x128xf32>
    %103 = arith.addf %100, %102 : vector<32x128xf32>
    %104 = arith.addf %89, %103 : vector<32x128xf32>
    %c0_41 = arith.constant 0 : index
    %c0_42 = arith.constant 0 : index
    %105 = vector.load %arg13[%c0_41, %c0_42] : memref<1x128xf32, #tpu.memory_space<vmem>>, vector<1x128xf32>
    %c0_43 = arith.constant 0 : index
    %c0_44 = arith.constant 0 : index
    %106 = vector.load %arg14[%c0_43, %c0_44] : memref<1x128xf32, #tpu.memory_space<vmem>>, vector<1x128xf32>
    %cst_45 = arith.constant dense<0.000000e+00> : vector<32xf32>
    %107 = vector.multi_reduction <add>, %104, %cst_45 [1] : vector<32x128xf32> to vector<32xf32>
    %108 = vector.shape_cast %107 : vector<32xf32> to vector<32x1xf32>
    %cst_46 = arith.constant 1.280000e+02 : f32
    %109 = vector.broadcast %cst_46 : f32 to vector<32x1xf32>
    %110 = arith.divf %108, %109 : vector<32x1xf32>
    %111 = vector.broadcast %110 : vector<32x1xf32> to vector<32x128xf32>
    %112 = arith.subf %104, %111 : vector<32x128xf32>
    %113 = arith.mulf %112, %112 : vector<32x128xf32>
    %cst_47 = arith.constant dense<0.000000e+00> : vector<32xf32>
    %114 = vector.multi_reduction <add>, %113, %cst_47 [1] : vector<32x128xf32> to vector<32xf32>
    %115 = vector.shape_cast %114 : vector<32xf32> to vector<32x1xf32>
    %cst_48 = arith.constant 0.00787401571 : f32
    %116 = vector.broadcast %cst_48 : f32 to vector<32x1xf32>
    %117 = arith.mulf %115, %116 : vector<32x1xf32>
    %118 = vector.broadcast %110 : vector<32x1xf32> to vector<32x128xf32>
    %119 = arith.subf %104, %118 : vector<32x128xf32>
    %120 = vector.broadcast %105 : vector<1x128xf32> to vector<32x128xf32>
    %121 = arith.mulf %120, %119 : vector<32x128xf32>
    %122 = math.sqrt %117 : vector<32x1xf32>
    %cst_49 = arith.constant 9.99999997E-7 : f32
    %123 = vector.broadcast %cst_49 : f32 to vector<32x1xf32>
    %124 = arith.addf %122, %123 : vector<32x1xf32>
    %125 = vector.broadcast %124 : vector<32x1xf32> to vector<32x128xf32>
    %126 = arith.divf %121, %125 : vector<32x128xf32>
    %127 = vector.broadcast %106 : vector<1x128xf32> to vector<32x128xf32>
    %128 = arith.addf %126, %127 : vector<32x128xf32>
    %129 = vector.shape_cast %128 : vector<32x128xf32> to vector<4x8x128xf32>
    %c0_50 = arith.constant 0 : index
    %c0_51 = arith.constant 0 : index
    %c0_52 = arith.constant 0 : index
    %130 = vector.load %arg15[%c0_50, %c0_51, %c0_52] : memref<4x8x128xf32, #tpu.memory_space<vmem>>, vector<4x8x128xf32>
    tpu.vector_store %arg15[%c0_50, %c0_51, %c0_52], %129 {strides = array<i32>} : memref<4x8x128xf32, #tpu.memory_space<vmem>>, vector<4x8x128xf32>,
    return
  }
  func.func @transform_0(%arg0: i32) -> (i32, i32, i32) {
    %c0_i32 = arith.constant 0 : i32
    %c0_i32_0 = arith.constant 0 : i32
    %c0_i32_1 = arith.constant 0 : i32
    return %arg0, %c0_i32, %c0_i32_0 : i32, i32, i32
  }
  func.func @transform_1(%arg0: i32) -> (i32, i32, i32) {
    %c0_i32 = arith.constant 0 : i32
    %c0_i32_0 = arith.constant 0 : i32
    %c0_i32_1 = arith.constant 0 : i32
    return %arg0, %c0_i32, %c0_i32_0 : i32, i32, i32
  }
  func.func @transform_2(%arg0: i32) -> (i32, i32) {
    %c0_i32 = arith.constant 0 : i32
    %c0_i32_0 = arith.constant 0 : i32
    %c0_i32_1 = arith.constant 0 : i32
    return %c0_i32, %c0_i32_0 : i32, i32
  }
  func.func @transform_3(%arg0: i32) -> (i32, i32) {
    %c0_i32 = arith.constant 0 : i32
    %c0_i32_0 = arith.constant 0 : i32
    %c0_i32_1 = arith.constant 0 : i32
    return %c0_i32, %c0_i32_0 : i32, i32
  }
  func.func @transform_4(%arg0: i32) -> (i32, i32) {
    %c0_i32 = arith.constant 0 : i32
    %c0_i32_0 = arith.constant 0 : i32
    %c0_i32_1 = arith.constant 0 : i32
    return %c0_i32, %c0_i32_0 : i32, i32
  }
  func.func @transform_5(%arg0: i32) -> (i32, i32) {
    %c0_i32 = arith.constant 0 : i32
    %c0_i32_0 = arith.constant 0 : i32
    %c0_i32_1 = arith.constant 0 : i32
    return %c0_i32, %c0_i32_0 : i32, i32
  }
  func.func @transform_6(%arg0: i32) -> (i32, i32) {
    %c0_i32 = arith.constant 0 : i32
    %c0_i32_0 = arith.constant 0 : i32
    %c0_i32_1 = arith.constant 0 : i32
    return %c0_i32, %c0_i32_0 : i32, i32
  }
  func.func @transform_7(%arg0: i32) -> (i32, i32) {
    %c0_i32 = arith.constant 0 : i32
    %c0_i32_0 = arith.constant 0 : i32
    %c0_i32_1 = arith.constant 0 : i32
    return %c0_i32, %c0_i32_0 : i32, i32
  }
  func.func @transform_8(%arg0: i32) -> (i32, i32) {
    %c0_i32 = arith.constant 0 : i32
    %c0_i32_0 = arith.constant 0 : i32
    %c0_i32_1 = arith.constant 0 : i32
    return %c0_i32, %c0_i32_0 : i32, i32
  }
  func.func @transform_9(%arg0: i32) -> (i32, i32) {
    %c0_i32 = arith.constant 0 : i32
    %c0_i32_0 = arith.constant 0 : i32
    %c0_i32_1 = arith.constant 0 : i32
    return %c0_i32, %c0_i32_0 : i32, i32
  }
  func.func @transform_10(%arg0: i32) -> (i32, i32) {
    %c0_i32 = arith.constant 0 : i32
    %c0_i32_0 = arith.constant 0 : i32
    %c0_i32_1 = arith.constant 0 : i32
    return %c0_i32, %c0_i32_0 : i32, i32
  }
  func.func @transform_11(%arg0: i32) -> (i32, i32) {
    %c0_i32 = arith.constant 0 : i32
    %c0_i32_0 = arith.constant 0 : i32
    %c0_i32_1 = arith.constant 0 : i32
    return %c0_i32, %c0_i32_0 : i32, i32
  }
  func.func @transform_12(%arg0: i32) -> (i32, i32) {
    %c0_i32 = arith.constant 0 : i32
    %c0_i32_0 = arith.constant 0 : i32
    %c0_i32_1 = arith.constant 0 : i32
    return %c0_i32, %c0_i32_0 : i32, i32
  }
  func.func @transform_13(%arg0: i32) -> (i32, i32) {
    %c0_i32 = arith.constant 0 : i32
    %c0_i32_0 = arith.constant 0 : i32
    %c0_i32_1 = arith.constant 0 : i32
    return %c0_i32, %c0_i32_0 : i32, i32
  }
  func.func @transform_14(%arg0: i32) -> (i32, i32, i32) {
    %c0_i32 = arith.constant 0 : i32
    %c0_i32_0 = arith.constant 0 : i32
    %c0_i32_1 = arith.constant 0 : i32
    return %arg0, %c0_i32, %c0_i32_0 : i32, i32, i32
  }
}

</mosaic_0001>

<bundles_post_ra>
// kernel: tpu_custom_call.1
= control target key start
LH: loop header
LB: loop body
LE: loop exit
PB: predicated region body
PF: predicated region fallthrough
CT: control target
= control target key end

     0   :  { %s4511_s0 = inlined_call_operand.hbm [shape: bf16[8,8,128], index: 0, kind: input, shape index: {}]   ;;  %s4512_s1 = inlined_call_operand.hbm [shape: f32[8,1,8], index: 1, kind: input, shape index: {}]   ;;  %s4513_s2 = inlined_call_operand.hbm [shape: bf16[128,384], index: 2, kind: input, shape index: {}]   ;;  %s4514_s3 = inlined_call_operand.hbm [shape: f32[1,384], index: 3, kind: input, shape index: {}]   ;;  %s4515_s4 = inlined_call_operand.hbm [shape: bf16[128,128], index: 4, kind: input, shape index: {}]   ;;  %s4516_s5 = inlined_call_operand.vmem [shape: f32[1,128], index: 5, kind: input, shape index: {}]   ;;  %s4517_s6 = inlined_call_operand.vmem [shape: f32[1,128], index: 6, kind: input, shape index: {}]   ;;  %s4518_s7 = inlined_call_operand.vmem [shape: f32[1,128], index: 7, kind: input, shape index: {}]   ;;  %s4519_s8 = inlined_call_operand.hbm [shape: bf16[128,256], index: 8, kind: input, shape index: {}]   ;;  %s4520_s9 = inlined_call_operand.vmem [shape: f32[1,256], index: 9, kind: input, shape index: {}]   ;;  %s4521_s10 = inlined_call_operand.hbm [shape: bf16[256,128], index: 10, kind: input, shape index: {}]   ;;  %s4522_s11 = inlined_call_operand.vmem [shape: f32[1,128], index: 11, kind: input, shape index: {}]   ;;  %s4523_s12 = inlined_call_operand.vmem [shape: f32[1,128], index: 12, kind: input, shape index: {}]   ;;  %s4524_s13 = inlined_call_operand.vmem [shape: f32[1,128], index: 13, kind: input, shape index: {}]   ;;  %s4525_s14 = inlined_call_operand.hbm [shape: f32[8,8,128], index: 14, kind: output, shape index: {}]  }
   0x1   :  { %4534 = sst [smem:[#allocation26_spill]] %s4513_s2 }
   0x2   :  { %4535 = sst [smem:[#allocation27_spill]] %s4514_s3 }
   0x3   :  { %4536 = sst [smem:[#allocation28_spill]] %s4515_s4 }
   0x4   :  { %4537 = sst [smem:[#allocation29_spill]] %s4519_s8 }
   0x5   :  { %4538 = sst [smem:[#allocation30_spill]] %s4521_s10 }
   0x6   :  { %4539 = sst [smem:[#allocation31_spill]] %s4523_s12 }
   0x7   :  { %4540 = sst [smem:[#allocation32_spill]] %s4524_s13 }
   0x8   :  { %4541 = sst [smem:[#allocation33_spill]] %s4525_s14 }
   0x9   :  { %19 = vsyncpa [#allocation3], 0 }
   0xa   :  { %21 = vsyncpa [#allocation3 + $0x1], 0 }
   0xb   :  { %22 = vsyncpa [#allocation6], 0 }
   0xc   :  { %24 = vsyncpa [#allocation6 + $0x1], 0 }
   0xd   :  { %25 = vsyncpa [#allocation9], 0 }
   0xe   :  { %26 = vsyncpa [#allocation12], 0 }
   0xf   :  { %27 = vsyncpa [#allocation4], 0 }
  0x10   :  { %29 = vsyncpa [#allocation4 + $0x1], 0  ;;  %s3811_s29 = smov 0   ;;  %s3813_s30 = smov 0  }
  0x11   :  { %s3815_s15 = smov 0   ;;  %s3817_s16 = smov 0  }
  0x12 LB: > { %4542 = sst [smem:[#allocation21_spill]] %s3703_s29  ;;  %s3835_s20 = sadd.s32 4294967295, %s3715_s16   ;;  %s3715_s16 = sphi %s3817_s16, %s4567_s16   ;;  %s3711_s15 = sphi %s3815_s15, %s4569_s15   ;;  %s3707_s30 = sphi %s3813_s30, %s4571_s30   ;;  %s3703_s29 = sphi %s3811_s29, %s4570_s29  }
  0x13   : > { %4543 = sst [smem:[#allocation22_spill]] %s3711_s15  ;;  %p2783_p0 = scmp.ge.s32.totalorder %s3715_s16, 1 }
  0x14   : > { %s4544_s2 = sld [smem:[#allocation26_spill]]  ;;  %p56_p1 = scmp.eq.s32.totalorder %s3835_s20, 0 }
  0x15   : > { %p370_p2 = scmp.lt.s32.totalorder %s3715_s16, 3  ;;  %s3717_s22 = smov [#allocation7]  }
  0x16   : > { %s383_s23 = sshll.u32 %s3717_s22, 4  ;;  %s4546_s3 = sld [smem:[#allocation27_spill]]  ;;  %s384_s23 = int_to_ptr.vmem [resolvable:$true] %s383_s23 }
  0x17   : > { %p3840_p3 = pnand %p2783_p0, %p370_p2  ;;  %s4548_s8 = sld [smem:[#allocation29_spill]] }
  0x18   : > { %s3718_s22 = smov [#allocation8]   ;;  %s3719_s14 = smov 192  }
  0x19   : > { %p3199_p4 = pneg %p3840_p3  ;;  %s3720_s13 = smov 12  }
  0x1a   : > { %s381_s19 = sshll.u32 %s4544_s2, 4  ;;  %s398_s2 = sshll.u32 %s3718_s22, 4  ;;  %s382_s19 = int_to_ptr.hbm [resolvable:$true] %s381_s19  ;;  %s399_s2 = int_to_ptr.vmem [resolvable:$true] %s398_s2 }
  0x1b   : > { %p3852_p6 = pnand %p3199_p4, %p56_p1  ;;  %s3721_s24 = smov [#allocation11]  }
  0x1c   : > { %s396_s26 = sshll.u32 %s4546_s3, 4  ;;  %s432_s25 = sshll.u32 %s3721_s24, 4  ;;  %s397_s26 = int_to_ptr.hbm [resolvable:$true] %s396_s26  ;;  %s433_s25 = int_to_ptr.vmem [resolvable:$true] %s432_s25 }
  0x1d   : > { %s430_s18 = sshll.u32 %s4548_s8, 4  ;;  %s4549_s4 = sld [smem:[#allocation28_spill]]  ;;  %s431_s18 = int_to_ptr.hbm [resolvable:$true] %s430_s18 }
  0x1e   : > { %3202 = dma.hbm_to_vmem [thread:$0]  (!%p3852_p6), %s382_s19, 3072, %s384_s23, [#allocation6], %s3719_s14, %s3719_s14, %s3720_s13  }
  0x1f   : > { %3205 = dma.hbm_to_vmem [thread:$0]  (!%p3852_p6), %s397_s26, 48, %s399_s2, [#allocation9]  }
  0x20   : > { %s3722_s17 = smov 128   ;;  %s3723_s22 = smov 8  }
  0x21   : > { %3211 = dma.hbm_to_vmem [thread:$0]  (!%p3852_p6), %s431_s18, 2048, %s433_s25, [#allocation12], %s3722_s17, %s3722_s17, %s3723_s22  }
  0x22   : > { %s3724_s13 = smov [#allocation10]   ;;  %s4527_s14 = smov 64  }
  0x23   : > { %s407_s28 = sshll.u32 %s4549_s4, 4  ;;  %s409_s2 = sshll.u32 %s3724_s13, 4  ;;  %s408_s28 = int_to_ptr.hbm [resolvable:$true] %s407_s28  ;;  %s410_s2 = int_to_ptr.vmem [resolvable:$true] %s409_s2 }
  0x24   : > { %s4528_s3 = smov 4   ;;  %s4550_s10 = sld [smem:[#allocation30_spill]] }
  0x25   : > { %3208 = dma.hbm_to_vmem [thread:$0]  (!%p3852_p6), %s408_s28, 1024, %s410_s2, [#allocation9], %s4527_s14, %s4527_s14, %s4528_s3  }
  0x26   : > { %s3727_s26 = smov [#allocation13]   ;;  %s2782_s24 = sadd.s32 4294967294, %s3715_s16  }
  0x27   : > { %s449_s18 = sshll.u32 %s3727_s26, 4  ;;  %s3883_s25 = sadd.s32 1, %s3715_s16   ;;  %s450_s18 = int_to_ptr.vmem [resolvable:$true] %s449_s18 }
  0x28   : > { %4551 = sst [smem:[#allocation23_spill]] %s3883_s25  ;;  %s42_s28 = sadd.s32 1, %s3711_s15 }
  0x29   : > { %s39_s17 = ssub.s32 %s3715_s16, %s3883_s25  ;;  %p49_p7 = scmp.ne.s32.totalorder %s3711_s15, %s3707_s30 }
  0x2a   : > { %s447_s23 = sshll.u32 %s4550_s10, 4  ;;  %p40_p8 = scmp.eq.s32.totalorder %s39_s17, 0  ;;  %s448_s23 = int_to_ptr.hbm [resolvable:$true] %s447_s23 }
  0x2b   : > { %3214 = dma.hbm_to_vmem [thread:$0]  (!%p3852_p6), %s448_s23, 2048, %s450_s18, [#allocation12], %s4527_s14, %s4527_s14, %s4528_s3  }
  0x2c   : > { %p50_p9 = scmp.eq.s32.totalorder %s3715_s16, 0  ;;  %p55_p10 = scmp.ne.s32.totalorder %s3707_s30, %s3703_s29 }
  0x2d   : > { %p357_p11 = scmp.eq.s32.totalorder %s3835_s20, 1  ;;  %p363_p2 = scmp.eq.s32.totalorder %s2782_s24, 1 }
  0x2e   : > { %s3895_s22 = scalar_select %p40_p8, %s3711_s15, %s42_s28  }
  0x2f   : > { %p3897_p12 = por %p50_p9, %p49_p7  ;;  %p3903_p13 = por %p56_p1, %p55_p10 }
  0x30   : > { %4552 = sst [smem:[#allocation24_spill]] %s3895_s22  ;;  %p3907_p0 = por %p357_p11, %p49_p7 }
  0x31   : > { %p3231_p4 = scmp.lt.s32.totalorder %s3715_s16, 2  ;;  %s3913_s12 = sand.u32 1, %s3711_s15  }
  0x32   : > { %p3915_p6 = por %p363_p2, %p55_p10  ;;  %s2790_s23 = sshll.u32 %s3913_s12, 4 }
  0x33   : > { %s3105_s26 = sshll.u32 %s3715_s16, 4  ;;  %s476_s3 = scalar_lea.vmem [#allocation2], %s2790_s23 }
  0x34   : > { %s4556_s19 = scalar_select %p3915_p6, 1, 0 }
  0x35   : > { %s481_s17 = scalar_lea.hbm %s4511_s0, %s3105_s26  ;;  %s484_s4 = sshll.u32 %s476_s3, 4  ;;  %s485_s4 = int_to_ptr.vmem [resolvable:$true] %s484_s4 }
  0x36   : > { %4557 = sst [smem:[#allocation25_spill]] %s4556_s19  ;;  %s482_s14 = sshll.u32 %s481_s17, 4  ;;  %s483_s14 = int_to_ptr.hbm [resolvable:$true] %s482_s14 }
  0x37   : > { %p3926_p7 = pnand %p3231_p4, %p3897_p12  ;;  %s494_s8 = sand.u32 1, %s3715_s16  }
  0x38   : > { %s2793_s10 = sshll.u32 %s3913_s12, 2  ;;  %s473_s22 = scalar_lea.sflag [#allocation3], %s3913_s12 }
  0x39   : > { %s3573_s15 = sshra.s32 %s483_s14, 4  ;;  %p3577_p9 = pneg %p3926_p7  ;;  %s3574_s15 = int_to_ptr.hbm [resolvable:$true] %s3573_s15 }
  0x3a   : > { %s3575_s25 = scalar_lea.hbm %s3574_s15, 16  ;;  %s3580_s23 = scalar_lea.hbm %s4511_s0, 32 }
  0x3b   : > { %p3576_p8 = scmp.ne.s32.totalorder %s3574_s15, %s3575_s25  ;;  %p3581_p12 = scmp.lt.s32.totalorder %s3574_s15, %s4511_s0 }
  0x3c   : > { %p3582_p2 = scmp.lt.s32.totalorder %s3580_s23, %s3575_s25 }
  0x3d   : > { %p3578_p10 = pnand %p3577_p9, %p3576_p8 }
  0x3e   : > { %p3583_p4 = por %p3582_p2, %p3581_p12 }
  0x3f   : > { %p3579_p11 = pneg %p3578_p10 }
  0x41   : > { %p3584_p5 = pnand %p3583_p4, %p3579_p11 }
  0x43   : > { %3587 = shalt.err (!%p3584_p5)
}
  0x44   : > { %s4559_s12 = smov 4   ;;  %s4560_s28 = smov 64  }
  0x45   : > { %3218 = dma.hbm_to_vmem [thread:$0]  (!%p3926_p7), %s483_s14, 256, %s485_s4, %s473_s22, %s4560_s28, %s4560_s28, %s4559_s12  }
  0x46   : > { %s2794_s17 = sshll.u32 %s3715_s16, 2  ;;  %s498_s19 = scalar_lea.vmem [#allocation5], %s2793_s10 }
  0x47   : > { %s505_s3 = sshll.u32 %s498_s19, 4  ;;  %s502_s26 = scalar_lea.hbm %s4512_s1, %s2794_s17  ;;  %s506_s3 = int_to_ptr.vmem [resolvable:$true] %s505_s3 }
  0x48   : > { %s503_s15 = sshll.u32 %s502_s26, 4  ;;  %s495_s25 = scalar_lea.sflag [#allocation6], %s494_s8  ;;  %s504_s15 = int_to_ptr.hbm [resolvable:$true] %s503_s15 }
  0x49   : > { %s3603_s23 = sshra.s32 %s504_s15, 4  ;;  %s3610_s10 = scalar_lea.hbm %s4512_s1, 8  ;;  %s3604_s23 = int_to_ptr.hbm [resolvable:$true] %s3603_s23 }
  0x4a   : > { %s3605_s18 = scalar_lea.hbm %s3604_s23, 4  ;;  %p3611_p11 = scmp.lt.s32.totalorder %s3604_s23, %s4512_s1 }
  0x4b   : > { %p3606_p5 = scmp.ne.s32.totalorder %s3604_s23, %s3605_s18  ;;  %p3612_p12 = scmp.lt.s32.totalorder %s3610_s10, %s3605_s18 }
  0x4d   : > { %p3608_p8 = pnand %p3606_p5, %p3577_p9  ;;  %p3613_p2 = por %p3612_p12, %p3611_p11 }
  0x4f   : > { %p3609_p10 = pneg %p3608_p8 }
  0x51   : > { %p3614_p4 = pnand %p3613_p2, %p3609_p10 }
  0x53   : > { %3617 = shalt.err (!%p3614_p4)
}
  0x54   : > { %s3728_s8 = smov 16   ;;  %s3729_s29 = smov 1  }
  0x55   : > { %3221 = dma.hbm_to_vmem [thread:$0]  (!%p3926_p7), %s504_s15, 64, %s506_s3, %s495_s25, %s3728_s8, %s3728_s8, %s3729_s29  }
  0x56   : > { %517 = sbr.rel (%p3840_p3) target bundleno = 2167 (0x877), region = 76  ;;  %s3967_s12 = sand.u32 (!%p3840_p3), 1, %s3707_s30  }
  0x57   : > { %s2796_s28 = sshll.u32 (!%p3840_p3), %s3967_s12, 4  ;;  %s520_s17 = scalar_lea.sflag (!%p3840_p3), [#allocation3], %s3967_s12 }
  0x58   : > { %s3971_s27 = scalar_lea.vmem (!%p3840_p3), [#allocation2], %s2796_s28 }
  0x5b   : > { %3678 = dma.done.wait (%p3903_p13), %s520_s17, 256  }
  0x5c   : > { %3680 = vsyncadd (%p3903_p13), %s520_s17, 4294967040  ;;  %s529_s21 = sand.u32 1, %s3835_s20   ;;  %s2797_s24 = sshll.u32 %s3967_s12, 2 }
  0x5d   : > { %s530_s3 = scalar_lea.sflag [#allocation6], %s529_s21  ;;  %s3979_s26 = scalar_lea.vmem [#allocation5], %s2797_s24 }
  0x5e   : > { %3682 = dma.done.wait (%p3903_p13), %s530_s3, 64  }
  0x5f   : > { %3684 = vsyncadd (%p3903_p13), %s530_s3, 4294967232 }
  0x60   : > { %3686 = dma.done.wait (%p56_p1), [#allocation6], 3072  }
  0x61   : > { %3688 = vsyncadd (%p56_p1), [#allocation6], 4294964224 }
  0x62   : > { %3690 = dma.done.wait (%p56_p1), [#allocation9], 1072  }
  0x63   : > { %3692 = vsyncadd (%p56_p1), [#allocation9], 4294966224 }
  0x64   : > { %3694 = dma.done.wait (%p56_p1), [#allocation12], 4096  }
  0x65   : > { %3696 = vsyncadd (%p56_p1), [#allocation12], 4294963200  ;;  %v2898_v0 = vld [vmem:[#allocation7 + $0xa8] sm:$0xf]  ;;  %v3130_v1 = vld [vmem:[#allocation7 + $0xb0] sm:$0xf0] }
  0x66   : > { %v3129_v2 = vld [vmem:[#allocation7 + $0xac] sm:$0xf]  ;;  %v2899_v3 = vor.u32 %v3130_v1, %v2898_v0  ;;  %v2900_v4 = vld [vmem:[#allocation7 + $0xb4] sm:$0xf0]  ;;  %v2886_v5 = vld [vmem:[#allocation7 + $0x90] sm:$0xf] }
  0x67   : > { %v3127_v6 = vld [vmem:[#allocation7 + $0x98] sm:$0xf0]  ;;  %v2903_v7 = vor.u32 %v3129_v2, %v2900_v4  ;;  %v3126_v8 = vld [vmem:[#allocation7 + $0x94] sm:$0xf]  ;;  %v2888_v9 = vld [vmem:[#allocation7 + $0x9c] sm:$0xf0] }
  0x68   : > { %801 = vmatpush.bf16.msra.mxu0 %v2899_v3  ;;  %v2887_v10 = vor.u32 %v3127_v6, %v2886_v5  ;;  %v2891_v11 = vor.u32 %v3126_v8, %v2888_v9  ;;  %v2874_v12 = vld [vmem:[#allocation7 + $0x78] sm:$0xf]  ;;  %v3124_v13 = vld [vmem:[#allocation7 + $0x80] sm:$0xf0]  ;;  %v3123_v14 = vld [vmem:[#allocation7 + $0x7c] sm:$0xf] }
  0x69   : > { %820 = vmatpush.bf16.msra.mxu1 %v2903_v7  ;;  %v2876_v15 = vld [vmem:[#allocation7 + $0x84] sm:$0xf0]  ;;  %v2875_v16 = vor.u32 %v3124_v13, %v2874_v12  ;;  %v2862_v18 = vld [vmem:[#allocation7 + $0x60] sm:$0xf]  ;;  %v3121_v19 = vld [vmem:[#allocation7 + $0x68] sm:$0xf0] }
  0x6a   : > { %v2879_v17 = vor.u32 %v3123_v14, %v2876_v15  ;;  %v3120_v20 = vld [vmem:[#allocation7 + $0x64] sm:$0xf]  ;;  %v2864_v21 = vld [vmem:[#allocation7 + $0x6c] sm:$0xf0]  ;;  %v2850_v22 = vld [vmem:[#allocation7 + $0x48] sm:$0xf]  ;;  %v2863_v23 = vor.u32 %v3121_v19, %v2862_v18 }
  0x6b   : > { %v3118_v24 = vld [vmem:[#allocation7 + $0x50] sm:$0xf0]  ;;  %v2867_v25 = vor.u32 %v3120_v20, %v2864_v21  ;;  %v3117_v26 = vld [vmem:[#allocation7 + $0x4c] sm:$0xf]  ;;  %v2852_v27 = vld [vmem:[#allocation7 + $0x54] sm:$0xf0] }
  0x6c   : > { %802 = vmatpush.bf16.msra.mxu0 %v2887_v10  ;;  %v2851_v28 = vor.u32 %v3118_v24, %v2850_v22  ;;  %v2855_v29 = vor.u32 %v3117_v26, %v2852_v27  ;;  %v2838_v30 = vld [vmem:[#allocation7 + $0x30] sm:$0xf]  ;;  %v3115_v31 = vld [vmem:[#allocation7 + $0x38] sm:$0xf0]  ;;  %v3114_v32 = vld [vmem:[#allocation7 + $0x34] sm:$0xf] }
  0x6d   : > { %821 = vmatpush.bf16.msra.mxu1 %v2891_v11  ;;  %v2840_v33 = vld [vmem:[#allocation7 + $0x3c] sm:$0xf0]  ;;  %v2839_v34 = vor.u32 %v3115_v31, %v2838_v30  ;;  %v2906_v35 = vld [vmem:[#allocation7 + $0xb0] sm:$0xf]  ;;  %v3131_v36 = vld [vmem:[#allocation7 + $0xb8] sm:$0xf0] }
  0x6e   : > { %v2894_v37 = vld [vmem:[#allocation7 + $0x98] sm:$0xf]  ;;  %v2843_v38 = vor.u32 %v3114_v32, %v2840_v33  ;;  %v3112_v40 = vld [vmem:[#allocation7 + $0x20] sm:$0xf0]  ;;  %v2907_v41 = vor.u32 %v3131_v36, %v2906_v35  ;;  %v3111_v43 = vld [vmem:[#allocation7 + $0x1c] sm:$0xf] }
  0x6f   : > { %v2826_v39 = vld [vmem:[#allocation7 + $0x18] sm:$0xf]  ;;  %v3128_v42 = vld [vmem:[#allocation7 + $0xa0] sm:$0xf0]  ;;  %v2828_v44 = vld [vmem:[#allocation7 + $0x24] sm:$0xf0] }
  0x70   : > { %803 = vmatpush.bf16.msra.mxu0 %v2875_v16  ;;  %839 = vmatpush.bf16.msra.mxu2 %v2907_v41  ;;  %v2895_v45 = vor.u32 %v3128_v42, %v2894_v37  ;;  %v2827_v46 = vor.u32 %v3112_v40, %v2826_v39  ;;  %v2882_v47 = vld [vmem:[#allocation7 + $0x80] sm:$0xf]  ;;  %v3125_v48 = vld [vmem:[#allocation7 + $0x88] sm:$0xf0]  ;;  %v2831_v49 = vor.u32 %v3111_v43, %v2828_v44  ;;  %v3108_v52 = vld [vmem:[#allocation7 + $0x4] sm:$0xf] }
  0x71   : > { %822 = vmatpush.bf16.msra.mxu1 %v2879_v17  ;;  %v2814_v50 = vld [vmem:[#allocation7] sm:$0xf]  ;;  %v3109_v51 = vld [vmem:[#allocation7 + $0x8] sm:$0xf0]  ;;  %v2816_v53 = vld [vmem:[#allocation7 + $0xc] sm:$0xf0]  ;;  %v2883_v54 = vor.u32 %v3125_v48, %v2882_v47 }
  0x72   : > { %v2815_v55 = vor.u32 %v3109_v51, %v2814_v50  ;;  %v2870_v56 = vld [vmem:[#allocation7 + $0x68] sm:$0xf]  ;;  %v3122_v57 = vld [vmem:[#allocation7 + $0x70] sm:$0xf0]  ;;  %v2819_v58 = vor.u32 %v3108_v52, %v2816_v53  ;;  %v2858_v61 = vld [vmem:[#allocation7 + $0x50] sm:$0xf] }
  0x73   : > { %v3106_v59 = vld [vmem:[%s3971_s27] sm:$0xff]  ;;  %v2871_v60 = vor.u32 %v3122_v57, %v2870_v56  ;;  %v3116_v1 = vld [vmem:[#allocation7 + $0x40] sm:$0xf0]  ;;  %v2834_v3 = vld [vmem:[#allocation7 + $0x20] sm:$0xf]  ;;  %vm962_vm0 = vcmask 261120  }
  0x74   : > { %804 = vmatpush.bf16.msra.mxu0 %v2863_v23  ;;  %840 = vmatpush.bf16.msra.mxu2 %v2895_v45  ;;  %v3119_v62 = vld [vmem:[#allocation7 + $0x58] sm:$0xf0]  ;;  %v2846_v0 = vld [vmem:[#allocation7 + $0x38] sm:$0xf]  ;;  %v3113_v4 = vld [vmem:[#allocation7 + $0x28] sm:$0xf0] }
  0x75   : > { %823 = vmatpush.bf16.msra.mxu1 %v2867_v25  ;;  %v2859_v63 = vor.u32 %v3119_v62, %v2858_v61  ;;  %v2847_v2 = vor.u32 %v3116_v1, %v2846_v0  ;;  %v2835_v5 = vor.u32 %v3113_v4, %v2834_v3  ;;  %v2822_v6 = vld [vmem:[#allocation7 + $0x8] sm:$0xf]  ;;  %v3110_v7 = vld [vmem:[#allocation7 + $0x10] sm:$0xf0]  ;;  %v653_v10 = vld [vmem:[#allocation8] sm:$0x7] }
  0x76   : > { %v3107_v8 = vld [vmem:[%s3971_s27 + $0x8] sm:$0xff]  ;;  %v2823_v9 = vor.u32 %v3110_v7, %v2822_v6  ;;  %v655_v11 = vperm.slane %v653_v10, 0  ;;  %v656_v12 = vperm.slane %v653_v10, 1  ;;  %s3730_s13 = smov 64   ;;  %s3731_s15 = smov 96   ;;  %v657_v43 = vperm.slane %v653_v10, 2 }
  0x77   : > { %s3732_s25 = smov 32   ;;  %v950_v1 = vld [vmem:[%s3979_s26] sm:$0x1]  ;;  %vm1311_vm1 = vcmask 64512   ;;  %vm1507_vm2 = vcmask 1043456   ;;  %vm1861_vm3 = vcmask 523264  }
  0x78   : > { %805 = vmatpush.bf16.msra.mxu0 %v2851_v28  ;;  %841 = vmatpush.bf16.msra.mxu2 %v2883_v54  ;;  %vm1866_vm4 = vcmask 785408   ;;  %s4561_s21 = sld [smem:[#allocation31_spill]]  ;;  %s2803_s24 = sshll.u32 %s3967_s12, 5 }
  0x79   : > { %824 = vmatpush.bf16.msra.mxu1 %v2855_v29  ;;  %s4563_s4 = sld [smem:[#allocation33_spill]]  ;;  %s2624_s22 = scalar_lea.sflag [#allocation4], %s3967_s12 }
  0x7c   : > { %806 = vmatpush.bf16.msra.mxu0 %v2839_v34  ;;  %842 = vmatpush.bf16.msra.mxu2 %v2871_v60 }
  0x7d   : > { %825 = vmatpush.bf16.msra.mxu1 %v2843_v38 }
  0x7f   : > { %s3653_s17 = scalar_lea.hbm %s4563_s4, 64 }
  0x80   : > { %807 = vmatpush.bf16.msra.mxu0 %v2827_v46  ;;  %843 = vmatpush.bf16.msra.mxu2 %v2859_v63 }
  0x81   : > { %826 = vmatpush.bf16.msra.mxu1 %v2831_v49 }
  0x84   : > { %808 = vmatpush.bf16.msra.mxu0 %v2815_v55  ;;  %844 = vmatpush.bf16.msra.mxu2 %v2847_v2  ;;  %v954_v2 = vsub.f32 1.0, %v950_v1 }
  0x85   : > { %827 = vmatpush.bf16.msra.mxu1 %v2819_v58 }
  0x87   : > { %809 = vmatmul.bf16.vlgmr.msra.gmra.mxu0 %v3106_v59 }
  0x88   : > { %828 = vmatmul.bf16.vlgmr.msra.gmra.mxu1 %v3106_v59  ;;  %845 = vmatpush.bf16.msra.mxu2 %v2835_v5 }
  0x8c   : > { %846 = vmatpush.bf16.msra.mxu2 %v2823_v9  ;;  %v958_v9 = vmul.f32 1e+10, %v954_v2 }
  0x8e   : > { %v4062_v10 = vperm.slane %v958_v9, 0 }
  0x8f   : > { %847 = vmatmul.bf16.vlgmr.msra.gmra.mxu2 %v3106_v59 }
  0x97   : > { %814 = vmatmul.bf16.gmra.mxu0 %v3107_v8 }
  0x98   : > { %833 = vmatmul.bf16.gmra.mxu1 %v3107_v8 }
  0x9f   : > { %852 = vmatmul.bf16.gmra.mxu2 %v3107_v8 }
 0x104   : > { %v810_v13 = vpop.f32.mrf.mxu0 }
 0x105   : > { %v811_v14 = vadd.f32 %v810_v13, %v655_v11  ;;  %v829_v15 = vpop.f32.mrf.mxu1 }
 0x106   : > { %v830_v16 = vadd.f32 %v829_v15, %v656_v12 }
 0x108   : > { %v858_v17 = vpack.c.bf16 %v830_v16, %v811_v14 }
 0x10a   : > { %v870_v18 = vrot.slane %v858_v17, 4 }
 0x10c   : > { %906 = vrot.lane.b32.xlu2 %v870_v18, %s3730_s13  ;;  %898 = vrot.lane.b32.xlu0 %v870_v18, %s3731_s15  ;;  %v812_v19 = vpop.f32.mrf.mxu0  ;;  %v967_v20 = vsel %vm962_vm0, %v870_v18, 0 }
 0x10d   : > { %v813_v21 = vadd.f32 %v812_v19, %v655_v11  ;;  %v831_v22 = vpop.f32.mrf.mxu1  ;;  %976 = vmatpush.bf16.xpose.msra.mxu3 %v967_v20 }
 0x10e   : > { %v832_v23 = vadd.f32 %v831_v22, %v656_v12 }
 0x110   : > { %v860_v24 = vpack.c.bf16 %v832_v23, %v813_v21 }
 0x112   : > { %v871_v25 = vrot.slane %v860_v24, 4  ;;  %v848_v41 = vpop.f32.mrf.mxu2 }
 0x113   : > { %v849_v44 = vadd.f32 %v848_v41, %v657_v43 }
 0x114   : > { %900 = vrot.lane.b32.xlu1 %v871_v25, %s3731_s15  ;;  %876 = vrot.lane.b32.xlu2 %v860_v24, %s3731_s15  ;;  %v815_v26 = vpop.f32.mrf.mxu0  ;;  %v986_v27 = vsel %vm962_vm0, %v871_v25, 0 }
 0x115   : > { %874 = vrot.lane.b32.xlu0 %v858_v17, %s3731_s15  ;;  %2908 = vmatmul.msk.bf16.vlgmr.msra.gmra.mxu3 %vm962_vm0, %v858_v17  ;;  %v816_v28 = vadd.f32 %v815_v26, %v655_v11  ;;  %v834_v29 = vpop.f32.mrf.mxu1  ;;  %v4029_v45 = vpack.c.bf16 %v849_v44, %v849_v44 }
 0x116   : > { %v835_v30 = vadd.f32 %v834_v29, %v656_v12  ;;  %995 = vmatpush.bf16.xpose.msrb.mxu3 %v986_v27 }
 0x117   : > { %v1509_v41 = vsel %vm1507_vm2, %v4029_v45, 0 }
 0x118   : > { %v862_v31 = vpack.c.bf16 %v835_v30, %v816_v28 }
 0x11a   : > { %v872_v32 = vrot.slane %v862_v31, 4  ;;  %v850_v42 = vpop.f32.mrf.mxu2 }
 0x11b   : > { %v851_v47 = vadd.f32 %v850_v42, %v657_v43 }
 0x11c   : > { %902 = vrot.lane.b32.xlu1 %v872_v32, %s3731_s15  ;;  %v817_v33 = vpop.f32.mrf.mxu0  ;;  %v1005_v34 = vsel %vm962_vm0, %v872_v32, 0 }
 0x11d   : > { %908 = vrot.lane.b32.xlu0 %v871_v25, %s3730_s13  ;;  %v818_v35 = vadd.f32 %v817_v33, %v655_v11  ;;  %v836_v36 = vpop.f32.mrf.mxu1  ;;  %v4035_v49 = vpack.c.bf16 %v851_v47, %v851_v47 }
 0x11e   : > { %1014 = vmatpush.bf16.xpose.msra.mxu3 %v1005_v34  ;;  %v837_v37 = vadd.f32 %v836_v36, %v656_v12 }
 0x11f   : > { %v1528_v42 = vsel %vm1507_vm2, %v4035_v49, 0 }
 0x120   : > { %v864_v38 = vpack.c.bf16 %v837_v37, %v818_v35 }
 0x122   : > { %v873_v39 = vrot.slane %v864_v38, 4  ;;  %v853_v46 = vpop.f32.mrf.mxu2 }
 0x123   : > { %v854_v48 = vadd.f32 %v853_v46, %v657_v43 }
 0x124   : > { %910 = vrot.lane.b32.xlu1 %v872_v32, %s3730_s13  ;;  %904 = vrot.lane.b32.xlu2 %v873_v39, %s3731_s15  ;;  %v1024_v40 = vsel %vm962_vm0, %v873_v39, 0 }
 0x125   : > { %878 = vrot.lane.b32.xlu0 %v862_v31, %s3731_s15  ;;  %2909 = vmatmul.msk.bf16.vlgmr.msrb.gmra.mxu3 %vm962_vm0, %v860_v24  ;;  %v4037_v50 = vpack.c.bf16 %v854_v48, %v854_v48 }
 0x126   : > { %1033 = vmatpush.bf16.xpose.msrb.mxu3 %v1024_v40 }
 0x12a   : > { %v855_v53 = vpop.f32.mrf.mxu2 }
 0x12b   : > { %v856_v54 = vadd.f32 %v855_v53, %v657_v43  ;;  %v1547_v43 = vsel %vm1507_vm2, %v4037_v50, 0 }
 0x12c   : > { %880 = vrot.lane.b32.xlu1 %v864_v38, %s3731_s15  ;;  %886 = vrot.lane.b32.xlu2 %v862_v31, %s3730_s13 }
 0x12d   : > { %882 = vrot.lane.b32.xlu0 %v858_v17, %s3730_s13  ;;  %v4050_v55 = vpack.c.bf16 %v856_v54, %v856_v54 }
 0x12f   : > { %v1566_v48 = vsel %vm1507_vm2, %v4050_v55, 0 }
 0x134   : > { %884 = vrot.lane.b32.xlu1 %v860_v24, %s3730_s13  ;;  %912 = vrot.lane.b32.xlu2 %v873_v39, %s3730_s13 }
 0x135   : > { %888 = vrot.lane.b32.xlu0 %v864_v38, %s3730_s13  ;;  %2910 = vmatmul.msk.bf16.vlgmr.msra.gmra.mxu3 %vm962_vm0, %v862_v31 }
 0x13c   : > { %914 = vrot.lane.b32.xlu1 %v870_v18, %s3732_s25  ;;  %916 = vrot.lane.b32.xlu2 %v871_v25, %s3732_s25  ;;  %v951_v18 = vld [vmem:[%s3979_s26 + $0x1] sm:$0x1] }
 0x13d   : > { %918 = vrot.lane.b32.xlu0 %v872_v32, %s3732_s25  ;;  %v955_v21 = vsub.f32 1.0, %v951_v18 }
 0x13f   : > { %v959_v25 = vmul.f32 1e+10, %v955_v21 }
 0x141   : > { %v4076_v26 = vperm.slane %v959_v25, 0 }
 0x144   : > { %920 = vrot.lane.b32.xlu1 %v873_v39, %s3732_s25  ;;  %890 = vrot.lane.b32.xlu2 %v858_v17, %s3732_s25 }
 0x145   : > { %892 = vrot.lane.b32.xlu0 %v860_v24, %s3732_s25  ;;  %2911 = vmatmul.msk.bf16.vlgmr.msrb.gmra.mxu3 %vm962_vm0, %v864_v38 }
 0x14c   : > { %894 = vrot.lane.b32.xlu1 %v862_v31, %s3732_s25  ;;  %896 = vrot.lane.b32.xlu2 %v864_v38, %s3732_s25  ;;  %v952_v31 = vld [vmem:[%s3979_s26 + $0x2] sm:$0x1] }
 0x14d   : > { %926 = vrot.lane.b32.xlu0 %v4029_v45, %s3731_s15  ;;  %v956_v34 = vsub.f32 1.0, %v952_v31 }
 0x14f   : > { %v960_v40 = vmul.f32 1e+10, %v956_v34 }
 0x151   : > { %v4095_v46 = vperm.slane %v960_v40, 0 }
 0x154   : > { %928 = vrot.lane.b32.xlu1 %v4035_v49, %s3731_s15  ;;  %932 = vrot.lane.b32.xlu2 %v4050_v55, %s3731_s15 }
 0x155   : > { %938 = vrot.lane.b32.xlu0 %v4037_v50, %s3730_s13 }
 0x15c   : > { %930 = vrot.lane.b32.xlu1 %v4037_v50, %s3731_s15 }
 0x164   : > { %934 = vrot.lane.b32.xlu1 %v4029_v45, %s3730_s13 }
 0x166   : > { %v907_v51 = vpop.permute.xlu2 %906 }
 0x167   : > { %v1119_v52 = vsel %vm962_vm0, %v907_v51, 0 }
 0x168   : > { %1128 = vmatpush.bf16.xpose.msrb.mxu0 %v1119_v52 }
 0x16c   : > { %936 = vrot.lane.b32.xlu1 %v4035_v49, %s3730_s13 }
 0x16e   : > { %v877_v56 = vpop.permute.xlu2 %876 }
 0x17e   : > { %v905_v57 = vpop.permute.xlu2 %904  ;;  %v899_v58 = vpop.permute.xlu0 %898 }
 0x17f   : > { %v1100_v59 = vsel %vm962_vm0, %v905_v57, 0  ;;  %v1043_v60 = vsel %vm962_vm0, %v899_v58, 0 }
 0x180   : > { %1052 = vmatpush.bf16.xpose.msrb.mxu1 %v1043_v60  ;;  %1109 = vmatpush.bf16.xpose.msra.mxu3 %v1100_v59 }
 0x186   : > { %v901_v61 = vpop.permute.xlu1 %900  ;;  %v887_v62 = vpop.permute.xlu2 %886 }
 0x187   : > { %v1062_v63 = vsel %vm962_vm0, %v901_v61, 0  ;;  %v875_v0 = vpop.permute.xlu0 %874 }
 0x188   : > { %2912 = vmatmul.msk.bf16.vlgmr.msrb.gmra.mxu1 %vm962_vm0, %v875_v0 }
 0x189   : > { %1071 = vmatpush.bf16.xpose.msra.mxu1 %v1062_v63 }
 0x18e   : > { %v903_v3 = vpop.permute.xlu1 %902  ;;  %v913_v4 = vpop.permute.xlu2 %912 }
 0x18f   : > { %v1176_v5 = vsel %vm962_vm0, %v913_v4, 0  ;;  %v909_v6 = vpop.permute.xlu0 %908  ;;  %v1081_v7 = vsel %vm962_vm0, %v903_v3, 0 }
 0x190   : > { %v1138_v8 = vsel %vm962_vm0, %v909_v6, 0  ;;  %1090 = vmatpush.bf16.xpose.msrb.mxu2 %v1081_v7  ;;  %1185 = vmatpush.bf16.xpose.msrb.mxu3 %v1176_v5 }
 0x191   : > { %1147 = vmatpush.bf16.xpose.msrb.mxu1 %v1138_v8 }
 0x196   : > { %v911_v11 = vpop.permute.xlu1 %910  ;;  %v917_v12 = vpop.permute.xlu2 %916 }
 0x197   : > { %v1157_v13 = vsel %vm962_vm0, %v911_v11, 0  ;;  %v1214_v14 = vsel %vm962_vm0, %v917_v12, 0  ;;  %v879_v15 = vpop.permute.xlu0 %878 }
 0x198   : > { %v978_v16 = vpop.f32.mrf.mxu3  ;;  %2913 = vmatmul.msk.bf16.vlgmr.msra.gmra.mxu1 %vm962_vm0, %v877_v56  ;;  %2914 = vmatmul.msk.bf16.vlgmr.msrb.gmra.mxu2 %vm962_vm0, %v879_v15  ;;  %v953_v56 = vld [vmem:[%s3979_s26 + $0x3] sm:$0x1] }
 0x199   : > { %v1279_v17 = vsub.f32 %v978_v16, %v4062_v10  ;;  %1166 = vmatpush.bf16.xpose.msra.mxu2 %v1157_v13  ;;  %1223 = vmatpush.bf16.xpose.msra.mxu1 %v1214_v14  ;;  %v957_v59 = vsub.f32 1.0, %v953_v56 }
 0x19b   : > { %v4070_v19 = vmul.f32 0.088388346, %v1279_v17  ;;  %v961_v1 = vmul.f32 1e+10, %v957_v59 }
 0x19d   : > { %v1312_v20 = vsel %vm1311_vm1, %v4070_v19, -inf  ;;  %v4111_v2 = vperm.slane %v961_v1, 0 }
 0x19e   : > { %1313 = vmax.xlane.f32.xlu0 %v1312_v20  ;;  %v881_v22 = vpop.permute.xlu1 %880  ;;  %v891_v44 = vpop.permute.xlu2 %890 }
 0x19f   : > { %v883_v23 = vpop.permute.xlu0 %882  ;;  %2915 = vmatmul.msk.bf16.vlgmr.msra.gmra.mxu3 %vm962_vm0, %v881_v22 }
 0x1a0   : > { %v980_v24 = vpop.f32.mrf.mxu3  ;;  %2916 = vmatmul.msk.bf16.vlgmr.msrb.gmra.mxu0 %vm962_vm0, %v883_v23 }
 0x1a6   : > { %v885_v27 = vpop.permute.xlu1 %884  ;;  %v897_v60 = vpop.permute.xlu2 %896 }
 0x1a7   : > { %v889_v28 = vpop.permute.xlu0 %888 }
 0x1a8   : > { %v997_v29 = vpop.f32.mrf.mxu3  ;;  %2917 = vmatmul.msk.bf16.vlgmr.msrb.gmra.mxu1 %vm962_vm0, %v885_v27  ;;  %2918 = vmatmul.msk.bf16.vlgmr.msra.gmra.mxu2 %vm962_vm0, %v887_v62 }
 0x1a9   : > { %v1280_v30 = vsub.f32 %v997_v29, %v4076_v26  ;;  %1537 = vmatpush.bf16.msrb.mxu1 %v1528_v42 }
 0x1ab   : > { %v4082_v32 = vmul.f32 0.088388346, %v1280_v30 }
 0x1ad   : > { %v1315_v33 = vsel %vm1311_vm1, %v4082_v32, -inf }
 0x1ae   : > { %1316 = vmax.xlane.f32.xlu1 %v1315_v33  ;;  %v915_v35 = vpop.permute.xlu1 %914  ;;  %v933_v16 = vpop.permute.xlu2 %932 }
 0x1af   : > { %v1195_v36 = vsel %vm962_vm0, %v915_v35, 0  ;;  %v919_v37 = vpop.permute.xlu0 %918  ;;  %2919 = vmatmul.msk.bf16.vlgmr.msrb.gmra.mxu3 %vm962_vm0, %v889_v28  ;;  %v1642_v17 = vsel %vm1507_vm2, %v933_v16, 0 }
 0x1b0   : > { %v1233_v38 = vsel %vm962_vm0, %v919_v37, 0  ;;  %v999_v39 = vpop.f32.mrf.mxu3  ;;  %1204 = vmatpush.bf16.xpose.msra.mxu0 %v1195_v36 }
 0x1b1   : > { %1242 = vmatpush.bf16.xpose.msrb.mxu2 %v1233_v38 }
 0x1b6   : > { %v921_v47 = vpop.permute.xlu1 %920 }
 0x1b7   : > { %v1252_v51 = vsel %vm962_vm0, %v921_v47, 0  ;;  %v893_v52 = vpop.permute.xlu0 %892  ;;  %2920 = vmatmul.msk.bf16.vlgmr.msra.gmra.mxu0 %vm962_vm0, %v891_v44 }
 0x1b8   : > { %1518 = vmatpush.bf16.msrb.mxu0 %v1509_v41  ;;  %v1016_v53 = vpop.f32.mrf.mxu3  ;;  %2921 = vmatmul.msk.bf16.vlgmr.msra.gmra.mxu1 %vm962_vm0, %v893_v52 }
 0x1b9   : > { %1556 = vmatpush.bf16.msra.mxu2 %v1547_v43  ;;  %1261 = vmatpush.bf16.xpose.msra.mxu3 %v1252_v51  ;;  %v1281_v54 = vsub.f32 %v1016_v53, %v4095_v46 }
 0x1bb   : > { %v4104_v57 = vmul.f32 0.088388346, %v1281_v54 }
 0x1bd   : > { %v1318_v58 = vsel %vm1311_vm1, %v4104_v57, -inf }
 0x1be   : > { %1319 = vmax.xlane.f32.xlu2 %v1318_v58  ;;  %v895_v61 = vpop.permute.xlu1 %894 }
 0x1bf   : > { %2922 = vmatmul.msk.bf16.vlgmr.msrb.gmra.mxu2 %vm962_vm0, %v895_v61  ;;  %v927_v62 = vpop.permute.xlu0 %926 }
 0x1c0   : > { %2923 = vmatmul.msk.bf16.vlgmr.msra.gmra.mxu3 %vm962_vm0, %v897_v60  ;;  %v1018_v63 = vpop.f32.mrf.mxu3  ;;  %v1585_v0 = vsel %vm1507_vm2, %v927_v62, 0 }
 0x1c1   : > { %1575 = vmatpush.bf16.msrb.mxu3 %v1566_v48  ;;  %1594 = vmatpush.bf16.msra.mxu0 %v1585_v0 }
 0x1c5   : > { %1651 = vmatpush.bf16.msra.mxu3 %v1642_v17 }
 0x1c6   : > { %v929_v3 = vpop.permute.xlu1 %928 }
 0x1c7   : > { %v1604_v4 = vsel %vm1507_vm2, %v929_v3, 0  ;;  %v4126_v21 = vpop.permute.xlu0 %938 }
 0x1c8   : > { %v1035_v5 = vpop.f32.mrf.mxu3  ;;  %1613 = vmatpush.bf16.msra.mxu1 %v1604_v4 }
 0x1c9   : > { %v1282_v6 = vsub.f32 %v1035_v5, %v4111_v2 }
 0x1cb   : > { %v4115_v7 = vmul.f32 0.088388346, %v1282_v6 }
 0x1cd   : > { %v1321_v8 = vsel %vm1311_vm1, %v4115_v7, -inf }
 0x1ce   : > { %1322 = vmax.xlane.f32.xlu2 %v1321_v8  ;;  %v931_v11 = vpop.permute.xlu1 %930 }
 0x1cf   : > { %v1623_v12 = vsel %vm1507_vm2, %v931_v11, 0 }
 0x1d0   : > { %v1037_v9 = vpop.f32.mrf.mxu3  ;;  %1632 = vmatpush.bf16.msrb.mxu2 %v1623_v12 }
 0x1d6   : > { %v4142_v42 = vpop.permute.xlu1 %934 }
 0x1de   : > { %v4155_v59 = vpop.permute.xlu1 %936 }
 0x205   : > { %v1054_v13 = vpop.f32.mrf.mxu1 }
 0x206   : > { %v1283_v14 = vsub.f32 %v1054_v13, %v4062_v10 }
 0x208   : > { %v4121_v15 = vmul.f32 0.088388346, %v1283_v14 }
 0x20a   : > { %v1324_v18 = vsel %vm1311_vm1, %v4121_v15, -inf }
 0x20b   : > { %1325 = vmax.xlane.f32.xlu0 %v1324_v18 }
 0x20d   : > { %v1056_v20 = vpop.f32.mrf.mxu1 }
 0x211   : > { %v1314_v27 = vpop.xlane.xlu0 %1313 }
 0x212   : > { %v1360_v30 = vsub.f32 %v4070_v19, %v1314_v27 }
 0x214   : > { %v1376_v37 = vmul.f32 1.442695, %v1360_v30 }
 0x215   : > { %v1073_v22 = vpop.f32.mrf.mxu1 }
 0x216   : > { %v1284_v31 = vsub.f32 %v1073_v22, %v4076_v26  ;;  %3325 = vpow2.f32 %v1376_v37 }
 0x218   : > { %v4138_v41 = vmul.f32 0.088388346, %v1284_v31 }
 0x21a   : > { %v1327_v43 = vsel %vm1311_vm1, %v4138_v41, -inf }
 0x21b   : > { %v1092_v23 = vpop.f32.mrf.mxu2 }
 0x21c   : > { %v4149_v53 = vpop.eup %3325  ;;  %v1285_v6 = vsub.f32 %v1092_v23, %v4095_v46 }
 0x21d   : > { %v1075_v24 = vpop.f32.mrf.mxu1  ;;  %v1130_v25 = vpop.f32.mrf.mxu0  ;;  %v1408_v56 = vsel %vm1311_vm1, %v4149_v53, 0.0 }
 0x21e   : > { %v1287_v28 = vsub.f32 %v1130_v25, %v4062_v10  ;;  %v4173_v14 = vmul.f32 0.088388346, %v1285_v6 }
 0x220   : > { %v4129_v29 = vmul.f32 0.088388346, %v1287_v28  ;;  %v1330_v23 = vsel %vm1311_vm1, %v4173_v14, -inf }
 0x221   : > { %v1317_v16 = vpop.xlane.xlu1 %1316 }
 0x222   : > { %v1336_v33 = vsel %vm1311_vm1, %v4129_v29, -inf  ;;  %v1111_v34 = vpop.f32.mrf.mxu3  ;;  %v1361_v18 = vsub.f32 %v4082_v32, %v1317_v16 }
 0x223   : > { %v1094_v35 = vpop.f32.mrf.mxu2  ;;  %1337 = vmax.xlane.f32.xlu1 %v1336_v33  ;;  %v1286_v36 = vsub.f32 %v1111_v34, %v4111_v2 }
 0x224   : > { %v1378_v31 = vmul.f32 1.442695, %v1361_v18 }
 0x225   : > { %v4136_v38 = vmul.f32 0.088388346, %v1286_v36  ;;  %v1132_v39 = vpop.f32.mrf.mxu0  ;;  %v1149_v40 = vpop.f32.mrf.mxu1 }
 0x226   : > { %v1288_v20 = vsub.f32 %v1149_v40, %v4076_v26 }
 0x227   : > { %v1333_v19 = vsel %vm1311_vm1, %v4136_v38, -inf }
 0x228   : > { %1334 = vmax.xlane.f32.xlu0 %v1333_v19  ;;  %v4182_v34 = vmul.f32 0.088388346, %v1288_v20 }
 0x22a   : > { %v1113_v44 = vpop.f32.mrf.mxu3 }
 0x22b   : > { %v1168_v47 = vpop.f32.mrf.mxu2  ;;  %1328 = vmax.xlane.f32.xlu1 %v1327_v43 }
 0x22c   : > { %v1289_v48 = vsub.f32 %v1168_v47, %v4095_v46 }
 0x22d   : > { %v1151_v51 = vpop.f32.mrf.mxu1 }
 0x22e   : > { %v4147_v52 = vmul.f32 0.088388346, %v1289_v48 }
 0x230   : > { %v1342_v54 = vsel %vm1311_vm1, %v4147_v52, -inf }
 0x231   : > { %1343 = vmax.xlane.f32.xlu0 %v1342_v54  ;;  %v1320_v8 = vpop.xlane.xlu2 %1319 }
 0x232   : > { %v1187_v58 = vpop.f32.mrf.mxu3 }
 0x233   : > { %v1170_v60 = vpop.f32.mrf.mxu2  ;;  %1409 = vadd.xlane.f32.xlu1 %v1408_v56  ;;  %v1290_v61 = vsub.f32 %v1187_v58, %v4111_v2 }
 0x234   : > { %v1206_v62 = vpop.f32.mrf.mxu0 }
 0x235   : > { %v1291_v63 = vsub.f32 %v1206_v62, %v4062_v10  ;;  %v1225_v0 = vpop.f32.mrf.mxu1  ;;  %v4159_v1 = vmul.f32 0.088388346, %v1290_v61 }
 0x236   : > { %v1292_v3 = vsub.f32 %v1225_v0, %v4076_v26 }
 0x237   : > { %v4162_v4 = vmul.f32 0.088388346, %v1291_v63  ;;  %v1345_v10 = vsel %vm1311_vm1, %v4159_v1, -inf }
 0x238   : > { %v4164_v5 = vmul.f32 0.088388346, %v1292_v3 }
 0x239   : > { %v1348_v9 = vsel %vm1311_vm1, %v4162_v4, -inf }
 0x23a   : > { %1349 = vmax.xlane.f32.xlu2 %v1348_v9  ;;  %v1351_v11 = vsel %vm1311_vm1, %v4164_v5, -inf  ;;  %v1189_v12 = vpop.f32.mrf.mxu3 }
 0x23b   : > { %1352 = vmax.xlane.f32.xlu0 %v1351_v11  ;;  %1346 = vmax.xlane.f32.xlu1 %v1345_v10 }
 0x23c   : > { %v1208_v13 = vpop.f32.mrf.mxu0 }
 0x23d   : > { %v1227_v17 = vpop.f32.mrf.mxu1 }
 0x241   : > { %v1323_v22 = vpop.xlane.xlu2 %1322 }
 0x242   : > { %v1363_v24 = vsub.f32 %v4115_v7, %v1323_v22  ;;  %v1244_v25 = vpop.f32.mrf.mxu2  ;;  %1331 = vmax.xlane.f32.xlu2 %v1330_v23 }
 0x243   : > { %v1263_v27 = vpop.f32.mrf.mxu3  ;;  %v1293_v28 = vsub.f32 %v1244_v25, %v4095_v46  ;;  %v1362_v46 = vsub.f32 %v4104_v57, %v1320_v8 }
 0x244   : > { %v1294_v30 = vsub.f32 %v1263_v27, %v4111_v2  ;;  %v1382_v33 = vmul.f32 1.442695, %v1363_v24  ;;  %v1339_v2 = vsel %vm1311_vm1, %v4182_v34, -inf  ;;  %v1661_v27 = vsel %vm1507_vm2, %v4142_v42, 0 }
 0x245   : > { %v4184_v32 = vmul.f32 0.088388346, %v1293_v28  ;;  %v1380_v40 = vmul.f32 1.442695, %v1362_v46 }
 0x246   : > { %v4186_v26 = vmul.f32 0.088388346, %v1294_v30  ;;  %3327 = vpow2.f32 %v1382_v33 }
 0x247   : > { %v1354_v35 = vsel %vm1311_vm1, %v4184_v32, -inf  ;;  %3329 = vpow2.f32 %v1378_v31 }
 0x248   : > { %v1357_v7 = vsel %vm1311_vm1, %v4186_v26, -inf  ;;  %1355 = vmax.xlane.f32.xlu0 %v1354_v35  ;;  %3331 = vpow2.f32 %v1380_v40 }
 0x249   : > { %1358 = vmax.xlane.f32.xlu1 %v1357_v7 }
 0x24a   : > { %v1246_v36 = vpop.f32.mrf.mxu2  ;;  %1340 = vmax.xlane.f32.xlu2 %v1339_v2 }
 0x24b   : > { %v1265_v37 = vpop.f32.mrf.mxu3 }
 0x24c   : > { %v4195_v39 = vpop.eup %3327 }
 0x24d   : > { %v4197_v19 = vpop.eup %3329  ;;  %v1417_v43 = vsel %vm1311_vm1, %v4195_v39, 0.0 }
 0x24e   : > { %v1411_v57 = vsel %vm1311_vm1, %v4197_v19, 0.0  ;;  %v4203_v44 = vpop.eup %3331 }
 0x24f   : > { %v1414_v47 = vsel %vm1311_vm1, %v4203_v44, 0.0 }
 0x250   : > { %1418 = vadd.xlane.f32.xlu0 %v1417_v43 }
 0x252   : > { %1412 = vadd.xlane.f32.xlu2 %v1411_v57 }
 0x25a   : > { %1415 = vadd.xlane.f32.xlu2 %v1414_v47 }
 0x27e   : > { %v1326_v48 = vpop.xlane.xlu0 %1325 }
 0x27f   : > { %v1364_v51 = vsub.f32 %v4121_v15, %v1326_v48 }
 0x281   : > { %v1384_v54 = vmul.f32 1.442695, %v1364_v51 }
 0x283   : > { %3333 = vpow2.f32 %v1384_v54 }
 0x289   : > { %v4208_v56 = vpop.eup %3333 }
 0x28a   : > { %v1420_v58 = vsel %vm1311_vm1, %v4208_v56, 0.0 }
 0x28b   : > { %1421 = vadd.xlane.f32.xlu1 %v1420_v58 }
 0x296   : > { %v1338_v60 = vpop.xlane.xlu1 %1337 }
 0x297   : > { %v1368_v61 = vsub.f32 %v4129_v29, %v1338_v60 }
 0x299   : > { %v1392_v62 = vmul.f32 1.442695, %v1368_v61 }
 0x29b   : > { %3335 = vpow2.f32 %v1392_v62  ;;  %v1335_v63 = vpop.xlane.xlu0 %1334 }
 0x29c   : > { %v1367_v31 = vsub.f32 %v4136_v38, %v1335_v63  ;;  %v1680_v63 = vsel %vm1507_vm2, %v4155_v59, 0 }
 0x29e   : > { %v1329_v0 = vpop.xlane.xlu1 %1328  ;;  %v1390_v35 = vmul.f32 1.442695, %v1367_v31 }
 0x29f   : > { %v1365_v3 = vsub.f32 %v4138_v41, %v1329_v0 }
 0x2a1   : > { %v4214_v6 = vpop.eup %3335  ;;  %v1386_v15 = vmul.f32 1.442695, %v1365_v3 }
 0x2a2   : > { %v1432_v8 = vsel %vm1311_vm1, %v4214_v6, 0.0 }
 0x2a3   : > { %3337 = vpow2.f32 %v1386_v15  ;;  %1433 = vadd.xlane.f32.xlu0 %v1432_v8  ;;  %v1699_v8 = vsel %vm1507_vm2, %v4126_v21, 0 }
 0x2a4   : > { %v1344_v9 = vpop.xlane.xlu0 %1343 }
 0x2a5   : > { %v1370_v11 = vsub.f32 %v4147_v52, %v1344_v9 }
 0x2a6   : > { %v1410_v10 = vpop.xlane.xlu1 %1409 }
 0x2a7   : > { %v1396_v12 = vmul.f32 1.442695, %v1370_v11  ;;  %3339 = vrcp.f32 %v1410_v10 }
 0x2a9   : > { %v4219_v29 = vpop.eup %3337  ;;  %3341 = vpow2.f32 %v1396_v12 }
 0x2aa   : > { %v1423_v41 = vsel %vm1311_vm1, %v4219_v29, 0.0 }
 0x2ab   : > { %1424 = vadd.xlane.f32.xlu2 %v1423_v41 }
 0x2ad   : > { %v3340_v13 = vpop.eup %3339  ;;  %v1350_v16 = vpop.xlane.xlu2 %1349 }
 0x2ae   : > { %v1472_v17 = vmul.f32 %v3340_v13, %v4149_v53  ;;  %v1372_v18 = vsub.f32 %v4162_v4, %v1350_v16  ;;  %v1353_v20 = vpop.xlane.xlu0 %1352  ;;  %v1347_v3 = vpop.xlane.xlu1 %1346 }
 0x2af   : > { %v4225_v22 = vpop.eup %3341  ;;  %v1373_v24 = vsub.f32 %v4164_v5, %v1353_v20 }
 0x2b0   : > { %v1488_v52 = vpack.c.bf16 %v1472_v17, %v1472_v17  ;;  %v1400_v23 = vmul.f32 1.442695, %v1372_v18  ;;  %v1438_v25 = vsel %vm1311_vm1, %v4225_v22, 0.0 }
 0x2b1   : > { %1439 = vadd.xlane.f32.xlu1 %v1438_v25  ;;  %v1402_v53 = vmul.f32 1.442695, %v1373_v24 }
 0x2b2   : > { %3343 = vpow2.f32 %v1400_v23  ;;  %2924 = vmatmul.msk.bf16.vlgmr.msrb.gmra.mxu0 %vm1311_vm1, %v1488_v52 }
 0x2b3   : > { %1670 = vmatpush.bf16.msrb.mxu0 %v1661_v27  ;;  %3345 = vpow2.f32 %v1402_v53 }
 0x2b5   : > { %v1332_v4 = vpop.xlane.xlu2 %1331 }
 0x2b6   : > { %v1366_v28 = vsub.f32 %v4173_v14, %v1332_v4 }
 0x2b8   : > { %v4234_v30 = vpop.eup %3343  ;;  %v1388_v5 = vmul.f32 1.442695, %v1366_v28 }
 0x2b9   : > { %v1444_v33 = vsel %vm1311_vm1, %v4234_v30, 0.0  ;;  %v4239_v46 = vpop.eup %3345 }
 0x2ba   : > { %3347 = vpow2.f32 %v1388_v5  ;;  %1445 = vadd.xlane.f32.xlu0 %v1444_v33  ;;  %v1447_v36 = vsel %vm1311_vm1, %v4239_v46, 0.0 }
 0x2bb   : > { %v1356_v42 = vpop.xlane.xlu0 %1355  ;;  %3349 = vpow2.f32 %v1390_v35 }
 0x2bc   : > { %v1359_v59 = vpop.xlane.xlu1 %1358 }
 0x2bd   : > { %v1341_v7 = vpop.xlane.xlu2 %1340  ;;  %v1375_v9 = vsub.f32 %v4186_v26, %v1359_v59 }
 0x2be   : > { %v1369_v14 = vsub.f32 %v4182_v34, %v1341_v7 }
 0x2bf   : > { %v1406_v11 = vmul.f32 1.442695, %v1375_v9 }
 0x2c0   : > { %v4241_v2 = vpop.eup %3347  ;;  %v1394_v40 = vmul.f32 1.442695, %v1369_v14 }
 0x2c1   : > { %v1426_v38 = vsel %vm1311_vm1, %v4241_v2, 0.0  ;;  %v4248_v57 = vpop.eup %3349 }
 0x2c2   : > { %1427 = vadd.xlane.f32.xlu2 %v1426_v38  ;;  %1448 = vadd.xlane.f32.xlu0 %v1447_v36  ;;  %v1429_v47 = vsel %vm1311_vm1, %v4248_v57, 0.0 }
 0x2c3   : > { %v1419_v37 = vpop.xlane.xlu0 %1418 }
 0x2c4   : > { %3351 = vrcp.f32 %v1419_v37 }
 0x2c5   : > { %v1413_v43 = vpop.xlane.xlu2 %1412 }
 0x2c6   : > { %3353 = vrcp.f32 %v1413_v43 }
 0x2c7   : > { %3355 = vpow2.f32 %v1394_v40 }
 0x2ca   : > { %v3352_v34 = vpop.eup %3351  ;;  %940 = vrot.lane.b32.xlu1 %v4050_v55, %s3730_s13  ;;  %1430 = vadd.xlane.f32.xlu2 %v1429_v47 }
 0x2cb   : > { %v1475_v48 = vmul.f32 %v3352_v34, %v4195_v39 }
 0x2cc   : > { %v3354_v51 = vpop.eup %3353 }
 0x2cd   : > { %v1491_v54 = vpack.c.bf16 %v1475_v48, %v1475_v48  ;;  %v1473_v58 = vmul.f32 %v3354_v51, %v4197_v19  ;;  %v1416_v60 = vpop.xlane.xlu2 %1415  ;;  %v4256_v61 = vpop.eup %3355 }
 0x2ce   : > { %3357 = vrcp.f32 %v1416_v60  ;;  %v1435_v0 = vsel %vm1311_vm1, %v4256_v61, 0.0 }
 0x2cf   : > { %v1489_v62 = vpack.c.bf16 %v1473_v58, %v1473_v58  ;;  %2927 = vmatmul.msk.bf16.vlgmr.msrb.gmra.mxu3 %vm1311_vm1, %v1491_v54  ;;  %3359 = vpow2.f32 %v1406_v11 }
 0x2d1   : > { %2925 = vmatmul.msk.bf16.vlgmr.msrb.gmra.mxu1 %vm1311_vm1, %v1489_v62 }
 0x2d2   : > { %1689 = vmatpush.bf16.msrb.mxu1 %v1680_v63  ;;  %1436 = vadd.xlane.f32.xlu2 %v1435_v0 }
 0x2d4   : > { %v3358_v39 = vpop.eup %3357 }
 0x2d5   : > { %v1474_v19 = vmul.f32 %v3358_v39, %v4203_v44  ;;  %v1374_v44 = vsub.f32 %v4184_v32, %v1356_v42  ;;  %v4274_v10 = vpop.eup %3359 }
 0x2d6   : > { %944 = vrot.lane.b32.xlu0 %v4035_v49, %s3732_s25  ;;  %v1453_v12 = vsel %vm1311_vm1, %v4274_v10, 0.0 }
 0x2d7   : > { %v1490_v15 = vpack.c.bf16 %v1474_v19, %v1474_v19  ;;  %v1404_v49 = vmul.f32 1.442695, %v1374_v44 }
 0x2d9   : > { %2926 = vmatmul.msk.bf16.vlgmr.msra.gmra.mxu2 %vm1311_vm1, %v1490_v15  ;;  %3361 = vpow2.f32 %v1404_v49 }
 0x2da   : > { %1708 = vmatpush.bf16.msra.mxu2 %v1699_v8 }
 0x2df   : > { %v4278_v21 = vpop.eup %3361 }
 0x2e0   : > { %v1450_v26 = vsel %vm1311_vm1, %v4278_v21, 0.0 }
 0x2ea   : > { %942 = vrot.lane.b32.xlu2 %v4029_v45, %s3732_s25  ;;  %v1371_v45 = vsub.f32 %v4159_v1, %v1347_v3 }
 0x2ec   : > { %v1398_v32 = vmul.f32 1.442695, %v1371_v45 }
 0x2f4   : > { %1454 = vadd.xlane.f32.xlu1 %v1453_v12 }
 0x2fe   : > { %v1422_v41 = vpop.xlane.xlu1 %1421 }
 0x2ff   : > { %3363 = vrcp.f32 %v1422_v41 }
 0x300   : > { %1451 = vadd.xlane.f32.xlu0 %v1450_v26  ;;  %3365 = vpow2.f32 %v1398_v32 }
 0x305   : > { %v3364_v13 = vpop.eup %3363 }
 0x306   : > { %v1476_v16 = vmul.f32 %v3364_v13, %v4208_v56  ;;  %v4285_v18 = vpop.eup %3365 }
 0x307   : > { %v1441_v20 = vsel %vm1311_vm1, %v4285_v18, 0.0 }
 0x308   : > { %v1492_v17 = vpack.c.bf16 %v1476_v16, %v1476_v16 }
 0x30a   : > { %2928 = vmatmul.msk.bf16.vlgmr.msra.gmra.mxu0 %vm1311_vm1, %v1492_v17 }
 0x313   : > { %1442 = vadd.xlane.f32.xlu2 %v1441_v20 }
 0x316   : > { %v1434_v52 = vpop.xlane.xlu0 %1433 }
 0x317   : > { %3367 = vrcp.f32 %v1434_v52 }
 0x31d   : > { %v3368_v23 = vpop.eup %3367 }
 0x31e   : > { %v1480_v24 = vmul.f32 %v3368_v23, %v4214_v6  ;;  %v1425_v1 = vpop.xlane.xlu2 %1424 }
 0x31f   : > { %3369 = vrcp.f32 %v1425_v1 }
 0x320   : > { %v1496_v25 = vpack.c.bf16 %v1480_v24, %v1480_v24 }
 0x322   : > { %2932 = vmatmul.msk.bf16.vlgmr.msrb.gmra.mxu0 %vm1311_vm1, %v1496_v25 }
 0x324   : > { %v1440_v6 = vpop.xlane.xlu1 %1439 }
 0x325   : > { %v3370_v56 = vpop.eup %3369 }
 0x326   : > { %v1477_v27 = vmul.f32 %v3370_v56, %v4219_v29 }
 0x328   : > { %v1493_v53 = vpack.c.bf16 %v1477_v27, %v1477_v27 }
 0x32a   : > { %2929 = vmatmul.msk.bf16.vlgmr.msra.gmra.mxu1 %vm1311_vm1, %v1493_v53 }
 0x32b   : > { %946 = vrot.lane.b32.xlu2 %v4037_v50, %s3732_s25 }
 0x32d   : > { %v1446_v31 = vpop.xlane.xlu0 %1445 }
 0x32f   : > { %v4295_v4 = vpop.f32.mrf.mxu0 }
 0x333   : > { %948 = vrot.lane.b32.xlu2 %v4050_v55, %s3732_s25 }
 0x335   : > { %v1428_v28 = vpop.xlane.xlu2 %1427  ;;  %v1449_v14 = vpop.xlane.xlu0 %1448 }
 0x336   : > { %3371 = vrcp.f32 %v1428_v28 }
 0x337   : > { %v1522_v5 = vpop.f32.mrf.mxu0 }
 0x33c   : > { %v3372_v33 = vpop.eup %3371  ;;  %v941_v42 = vpop.permute.xlu1 %940 }
 0x33d   : > { %v1478_v29 = vmul.f32 %v3372_v33, %v4241_v2  ;;  %v1718_v35 = vsel %vm1507_vm2, %v941_v42, 0  ;;  %v1431_v7 = vpop.xlane.xlu2 %1430 }
 0x33e   : > { %3373 = vrcp.f32 %v1431_v7  ;;  %1727 = vmatpush.bf16.msrb.mxu3 %v1718_v35 }
 0x33f   : > { %v1494_v50 = vpack.c.bf16 %v1478_v29, %v1478_v29  ;;  %3375 = vrcp.f32 %v1440_v6 }
 0x340   : > { %3377 = vrcp.f32 %v1446_v31 }
 0x341   : > { %2930 = vmatmul.msk.bf16.vlgmr.msrb.gmra.mxu2 %vm1311_vm1, %v1494_v50 }
 0x344   : > { %v3374_v55 = vpop.eup %3373 }
 0x345   : > { %v1479_v38 = vmul.f32 %v3374_v55, %v4248_v57  ;;  %v1437_v36 = vpop.xlane.xlu2 %1436  ;;  %v3376_v40 = vpop.eup %3375 }
 0x346   : > { %3379 = vrcp.f32 %v1437_v36  ;;  %v3378_v2 = vpop.eup %3377  ;;  %v1482_v34 = vmul.f32 %v3376_v40, %v4225_v22  ;;  %v3139_v40 = vld [vmem:[#allocation10 + $0x38] sm:$0xff] }
 0x347   : > { %v1495_v37 = vpack.c.bf16 %v1479_v38, %v1479_v38  ;;  %v1484_v51 = vmul.f32 %v3378_v2, %v4234_v30  ;;  %3381 = vrcp.f32 %v1449_v14  ;;  %v3137_v2 = vld [vmem:[#allocation10 + $0x28] sm:$0xff] }
 0x348   : > { %v945_v43 = vpop.permute.xlu0 %944  ;;  %v1498_v62 = vpack.c.bf16 %v1482_v34, %v1482_v34 }
 0x349   : > { %v1756_v47 = vsel %vm1507_vm2, %v945_v43, 0  ;;  %2931 = vmatmul.msk.bf16.vlgmr.msra.gmra.mxu3 %vm1311_vm1, %v1495_v37  ;;  %v1500_v0 = vpack.c.bf16 %v1484_v51, %v1484_v51  ;;  %v3138_v43 = vld [vmem:[#allocation10 + $0x30] sm:$0xff]  ;;  %v3135_v51 = vld [vmem:[#allocation10 + $0x18] sm:$0xff] }
 0x34a   : > { %1765 = vmatpush.bf16.msra.mxu1 %v1756_v47 }
 0x34c   : > { %v3380_v48 = vpop.eup %3379 }
 0x34d   : > { %v1481_v54 = vmul.f32 %v3380_v48, %v4256_v61  ;;  %v943_v58 = vpop.permute.xlu2 %942  ;;  %v3382_v61 = vpop.eup %3381  ;;  %v3136_v48 = vld [vmem:[#allocation10 + $0x20] sm:$0xff] }
 0x34e   : > { %v1737_v57 = vsel %vm1507_vm2, %v943_v58, 0  ;;  %v4309_v60 = vpop.f32.mrf.mxu1  ;;  %v1485_v19 = vmul.f32 %v3382_v61, %v4239_v46 }
 0x34f   : > { %v1497_v63 = vpack.c.bf16 %v1481_v54, %v1481_v54  ;;  %1746 = vmatpush.bf16.msra.mxu0 %v1737_v57  ;;  %v3134_v57 = vld [vmem:[#allocation10 + $0x10] sm:$0xff] }
 0x350   : > { %v1501_v15 = vpack.c.bf16 %v1485_v19, %v1485_v19 }
 0x351   : > { %2933 = vmatmul.msk.bf16.vlgmr.msrb.gmra.mxu1 %vm1311_vm1, %v1497_v63  ;;  %2934 = vmatmul.msk.bf16.vlgmr.msra.gmra.mxu2 %vm1311_vm1, %v1498_v62  ;;  %v3133_v62 = vld [vmem:[#allocation10 + $0x8] sm:$0xff] }
 0x352   : > { %v4313_v22 = vpop.f32.mrf.mxu3  ;;  %2936 = vmatmul.msk.bf16.vlgmr.msra.gmra.mxu0 %vm1311_vm1, %v1500_v0  ;;  %v3132_v0 = vld [vmem:[#allocation10] sm:$0xff] }
 0x353   : > { %1941 = vmatpush.bf16.msrb.mxu0 %v3139_v40  ;;  %v3733_v40 = vmov 128.0  }
 0x356   : > { %v1541_v30 = vpop.f32.mrf.mxu1 }
 0x357   : > { %1942 = vmatpush.bf16.msrb.mxu0 %v3138_v43 }
 0x35a   : > { %v1579_v39 = vpop.f32.mrf.mxu3 }
 0x35b   : > { %1943 = vmatpush.bf16.msrb.mxu0 %v3137_v2 }
 0x35c   : > { %v4317_v3 = vpop.f32.mrf.mxu2 }
 0x35f   : > { %1944 = vmatpush.bf16.msrb.mxu0 %v3136_v48 }
 0x361   : > { %2937 = vmatmul.msk.bf16.vlgmr.msra.gmra.mxu1 %vm1311_vm1, %v1501_v15 }
 0x363   : > { %1945 = vmatpush.bf16.msrb.mxu0 %v3135_v51 }
 0x364   : > { %v1560_v8 = vpop.f32.mrf.mxu2 }
 0x367   : > { %v1455_v13 = vpop.xlane.xlu1 %1454  ;;  %1946 = vmatpush.bf16.msrb.mxu0 %v3134_v57 }
 0x36b   : > { %1947 = vmatpush.bf16.msrb.mxu0 %v3133_v62 }
 0x36f   : > { %1948 = vmatpush.bf16.msrb.mxu0 %v3132_v0 }
 0x373   : > { %v1452_v59 = vpop.xlane.xlu0 %1451 }
 0x374   : > { %3383 = vrcp.f32 %v1452_v59 }
 0x37a   : > { %v3384_v44 = vpop.eup %3383 }
 0x37b   : > { %v1486_v12 = vmul.f32 %v3384_v44, %v4278_v21 }
 0x37d   : > { %v1502_v16 = vpack.c.bf16 %v1486_v12, %v1486_v12 }
 0x386   : > { %v1443_v9 = vpop.xlane.xlu2 %1442 }
 0x387   : > { %3385 = vrcp.f32 %v1443_v9  ;;  %v1596_v11 = vpop.f32.mrf.mxu0 }
 0x388   : > { %3387 = vrcp.f32 %v1455_v13 }
 0x389   : > { %3389 = vrcp.f32 %v3733_v40 }
 0x38d   : > { %v3386_v49 = vpop.eup %3385 }
 0x38e   : > { %v1483_v41 = vmul.f32 %v3386_v49, %v4285_v18  ;;  %v947_v26 = vpop.permute.xlu2 %946  ;;  %v3388_v21 = vpop.eup %3387 }
 0x38f   : > { %v1775_v46 = vsel %vm1507_vm2, %v947_v26, 0  ;;  %v1598_v45 = vpop.f32.mrf.mxu0  ;;  %v1487_v18 = vmul.f32 %v3388_v21, %v4274_v10  ;;  %v3390_v43 = vpop.eup %3389 }
 0x390   : > { %v1499_v32 = vpack.c.bf16 %v1483_v41, %v1483_v41  ;;  %1784 = vmatpush.bf16.msrb.mxu2 %v1775_v46  ;;  %v1975_v2 = vmul.f32 128.0, %v3390_v43  ;;  %vm1979_vm5 = vweird.f32 %v3390_v43 }
 0x391   : > { %v1503_v23 = vpack.c.bf16 %v1487_v18, %v1487_v18 }
 0x392   : > { %2935 = vmatmul.msk.bf16.vlgmr.msrb.gmra.mxu3 %vm1311_vm1, %v1499_v32 }
 0x393   : > { %2938 = vmatmul.msk.bf16.vlgmr.msrb.gmra.mxu2 %vm1311_vm1, %v1502_v16 }
 0x396   : > { %v949_v17 = vpop.permute.xlu2 %948 }
 0x397   : > { %v1794_v20 = vsel %vm1507_vm2, %v949_v17, 0 }
 0x398   : > { %1803 = vmatpush.bf16.msra.mxu3 %v1794_v20 }
 0x39f   : > { %v1672_v52 = vpop.f32.mrf.mxu0 }
 0x3a2   : > { %2939 = vmatmul.msk.bf16.vlgmr.msra.gmra.mxu3 %vm1311_vm1, %v1503_v23 }
 0x3a7   : > { %v1615_v24 = vpop.f32.mrf.mxu1  ;;  %v1674_v1 = vpop.f32.mrf.mxu0 }
 0x3a8   : > { %v3289_v25 = vpack.i.bf16 %v1615_v24, %v1596_v11 }
 0x3aa   : > { %3290 = vrot.lane.b32.xlu2 %v3289_v25, %s3732_s25 }
 0x3af   : > { %v1617_v56 = vpop.f32.mrf.mxu1 }
 0x3c4   : > { %v1634_v27 = vpop.f32.mrf.mxu2 }
 0x3cc   : > { %v1636_v53 = vpop.f32.mrf.mxu2  ;;  %v1653_v6 = vpop.f32.mrf.mxu3 }
 0x3cd   : > { %v3304_v29 = vpack.i.bf16 %v1653_v6, %v1634_v27  ;;  %v613_v53 = vld [vmem:[%s3971_s27] sm:$0xff]  }
 0x3ce   : > { %v1691_v28 = vpop.f32.mrf.mxu1  ;;  %v617_v6 = vunpack.c.l.bf16 %v613_v53 }
 0x3cf   : > { %v3294_v31 = vpack.i.bf16 %v1691_v28, %v1672_v52  ;;  %v1748_v5 = vpop.f32.mrf.mxu0 }
 0x3d1   : > { %3295 = vrot.lane.b32.xlu2 %v3294_v31, %s3730_s13 }
 0x3d4   : > { %v1655_v33 = vpop.f32.mrf.mxu3  ;;  %v1710_v10 = vpop.f32.mrf.mxu2 }
 0x3d6   : > { %v1693_v42 = vpop.f32.mrf.mxu1 }
 0x3d7   : > { %v1750_v35 = vpop.f32.mrf.mxu0 }
 0x3d9   : > { %3305 = vrot.lane.b32.xlu2 %v3304_v29, %s3732_s25  ;;  %v615_v29 = vld [vmem:[%s3971_s27 + $0x8] sm:$0xff]   ;;  %s3172_s25 = sshll.u32 %s3835_s20, 5 }
 0x3da   : > { %v619_v35 = vunpack.c.l.bf16 %v615_v29  ;;  %s2635_s14 = scalar_lea.hbm %s4563_s4, %s3172_s25 }
 0x3db   : > { %s2638_s10 = sshll.u32 %s2635_s14, 4  ;;  %s2639_s10 = int_to_ptr.hbm [resolvable:$true] %s2638_s10 }
 0x3dc   : > { %v1712_v7 = vpop.f32.mrf.mxu2  ;;  %s3647_s19 = sshra.s32 %s2639_s10, 4  ;;  %s3648_s19 = int_to_ptr.hbm [resolvable:$true] %s3647_s19 }
 0x3dd   : > { %s3649_s8 = scalar_lea.hbm %s3648_s19, 32  ;;  %p3654_p7 = scmp.lt.s32.totalorder %s3648_s19, %s4563_s4 }
 0x3de   : > { %v1767_v50 = vpop.f32.mrf.mxu1  ;;  %p3650_p1 = scmp.ne.s32.totalorder %s3648_s19, %s3649_s8  ;;  %p3655_p9 = scmp.lt.s32.totalorder %s3653_s17, %s3649_s8 }
 0x3df   : > { %v3299_v14 = vpack.i.bf16 %v1767_v50, %v1748_v5  ;;  %v618_v5 = vunpack.c.h.bf16 %v613_v53 }
 0x3e0   : > { %p3651_p3 = pnand %p3650_p1, %p3907_p0  ;;  %p3656_p5 = por %p3655_p9, %p3654_p7 }
 0x3e1   : > { %3300 = vrot.lane.b32.xlu0 %v3299_v14, %s3731_s15 }
 0x3e2   : > { %p3652_p13 = pneg %p3651_p3 }
 0x3e4   : > { %p3657_p8 = pnand %p3656_p5, %p3652_p13 }
 0x3e6   : > { %v1769_v55 = vpop.f32.mrf.mxu1 }
 0x3e7   : > { %v620_v55 = vunpack.c.h.bf16 %v615_v29 }
 0x404   : > { %v3291_v30 = vpop.permute.xlu2 %3290 }
 0x405   : > { %v3293_v39 = vunpack.i.h.bf16 %v3291_v30  ;;  %v3292_v19 = vunpack.i.l.bf16 %v3291_v30 }
 0x407   : > { %v1858_v9 = vsel %vm962_vm0, %v4309_v60, %v3293_v39  ;;  %v1857_v11 = vsel %vm962_vm0, %v4295_v4, %v3292_v19 }
 0x415   : > { %v1729_v38 = vpop.f32.mrf.mxu3 }
 0x416   : > { %v3309_v36 = vpack.i.bf16 %v1729_v38, %v1710_v10  ;;  %v1786_v37 = vpop.f32.mrf.mxu2 }
 0x418   : > { %3310 = vrot.lane.b32.xlu1 %v3309_v36, %s3730_s13  ;;  %s4562_s13 = sld [smem:[#allocation32_spill]] }
 0x41d   : > { %v1731_v47 = vpop.f32.mrf.mxu3 }
 0x41e   : > { %v1788_v34 = vpop.f32.mrf.mxu2  ;;  %v1976_v47 = vsub.f32 1.0, %v1975_v2  ;;  %v3143_v2 = vld [vmem:[#allocation11 + $0x14] sm:$0xf0] }
 0x420   : > { %v1977_v34 = vmul.f32 %v3390_v43, %v1976_v47 }
 0x422   : > { %v1978_v48 = vadd.f32 %v3390_v43, %v1977_v34 }
 0x424   : > { %v4355_v51 = vsel %vm1979_vm5, %v3390_v43, %v1978_v48  ;;  %v2982_v43 = vld [vmem:[#allocation11 + $0x10] sm:$0xf]  ;;  %v3142_v48 = vld [vmem:[#allocation11 + $0x14] sm:$0xf] }
 0x425   : > { %v1805_v54 = vpop.f32.mrf.mxu3 }
 0x426   : > { %v3314_v58 = vpack.i.bf16 %v1805_v54, %v1786_v37 }
 0x428   : > { %3315 = vrot.lane.b32.xlu2 %v3314_v58, %s3731_s15  ;;  %s4463_s15 = scalar_lea.vmem [#allocation14], %s2803_s24 }
 0x429   : > { %s2636_s20 = sshll.u32 %s4463_s15, 4  ;;  %s2637_s20 = int_to_ptr.vmem [resolvable:$true] %s2636_s20 }
 0x42b   : > { %v3296_v61 = vpop.permute.xlu2 %3295 }
 0x42c   : > { %v3298_v15 = vunpack.i.h.bf16 %v3296_v61  ;;  %v3297_v8 = vunpack.i.l.bf16 %v3296_v61 }
 0x42d   : > { %v1807_v63 = vpop.f32.mrf.mxu3 }
 0x42e   : > { %v1863_v12 = vsel %vm1861_vm3, %v1858_v9, %v3298_v15  ;;  %v1862_v41 = vsel %vm1861_vm3, %v1857_v11, %v3297_v8 }
 0x433   : > { %v3306_v13 = vpop.permute.xlu2 %3305 }
 0x434   : > { %v3308_v32 = vunpack.i.h.bf16 %v3306_v13  ;;  %v3307_v16 = vunpack.i.l.bf16 %v3306_v13  ;;  %v3022_v13 = vld [vmem:[#allocation11 + $0x60] sm:$0xf] }
 0x436   : > { %v1860_v21 = vsel %vm962_vm0, %v4313_v22, %v3308_v32  ;;  %v1859_v18 = vsel %vm962_vm0, %v4317_v3, %v3307_v16  ;;  %v3319_v22 = vld [vmem:[%s4516_s5] ss:$0 sm:$0xff]  ;;  %v3153_v32 = vld [vmem:[#allocation11 + $0x64] sm:$0xf0]  ;;  %v3152_v16 = vld [vmem:[#allocation11 + $0x64] sm:$0xf] }
 0x453   : > { %v3301_v59 = vpop.permute.xlu0 %3300 }
 0x454   : > { %v3303_v44 = vunpack.i.h.bf16 %v3301_v59  ;;  %v3302_v49 = vunpack.i.l.bf16 %v3301_v59 }
 0x456   : > { %v1868_v26 = vsel %vm1866_vm4, %v1863_v12, %v3303_v44  ;;  %v1867_v46 = vsel %vm1866_vm4, %v1862_v41, %v3302_v49  ;;  %v3030_v49 = vld [vmem:[#allocation11 + $0x70] sm:$0xf]  ;;  %v3155_v12 = vld [vmem:[#allocation11 + $0x74] sm:$0xf0]  ;;  %v3154_v41 = vld [vmem:[#allocation11 + $0x74] sm:$0xf] }
 0x457   : > { %v1871_v45 = vpack.c.bf16 %v1868_v26, %v1867_v46  ;;  %v3031_v26 = vor.u32 %v3155_v12, %v3030_v49  ;;  %v3032_v46 = vld [vmem:[#allocation11 + $0x78] sm:$0xf0] }
 0x459   : > { %1949 = vmatmul.bf16.vlgmr.msrb.gmra.mxu0 %v1871_v45  ;;  %v3035_v45 = vor.u32 %v3154_v41, %v3032_v46  ;;  %2235 = vmatpush.bf16.msrb.mxu1 %v3031_v26 }
 0x45b   : > { %2254 = vmatpush.bf16.msra.mxu2 %v3035_v45 }
 0x482   : > { %v3316_v60 = vpop.permute.xlu2 %3315 }
 0x483   : > { %v3318_v52 = vunpack.i.h.bf16 %v3316_v60  ;;  %v3317_v23 = vunpack.i.l.bf16 %v3316_v60  ;;  %v3023_v60 = vor.u32 %v3153_v32, %v3022_v13 }
 0x485   : > { %2236 = vmatpush.bf16.msrb.mxu1 %v3023_v60 }
 0x48a   : > { %v3311_v17 = vpop.permute.xlu1 %3310 }
 0x48b   : > { %v3313_v20 = vunpack.i.h.bf16 %v3311_v17  ;;  %v3312_v4 = vunpack.i.l.bf16 %v3311_v17  ;;  %v3024_v17 = vld [vmem:[#allocation11 + $0x68] sm:$0xf0] }
 0x48d   : > { %v1864_v24 = vsel %vm1861_vm3, %v1859_v18, %v3312_v4  ;;  %v1865_v1 = vsel %vm1861_vm3, %v1860_v21, %v3313_v20  ;;  %v3027_v20 = vor.u32 %v3152_v16, %v3024_v17  ;;  %v3014_v18 = vld [vmem:[#allocation11 + $0x50] sm:$0xf] }
 0x48e   : > { %v1869_v25 = vsel %vm1866_vm4, %v1864_v24, %v3317_v23  ;;  %v1870_v56 = vsel %vm1866_vm4, %v1865_v1, %v3318_v52  ;;  %v3151_v52 = vld [vmem:[#allocation11 + $0x54] sm:$0xf0]  ;;  %v3150_v24 = vld [vmem:[#allocation11 + $0x54] sm:$0xf]  ;;  %v3016_v1 = vld [vmem:[#allocation11 + $0x58] sm:$0xf0] }
 0x48f   : > { %v1872_v27 = vpack.c.bf16 %v1870_v56, %v1869_v25  ;;  %2255 = vmatpush.bf16.msra.mxu2 %v3027_v20  ;;  %v3015_v23 = vor.u32 %v3151_v52, %v3014_v18  ;;  %v3006_v25 = vld [vmem:[#allocation11 + $0x40] sm:$0xf]  ;;  %v3149_v56 = vld [vmem:[#allocation11 + $0x44] sm:$0xf0] }
 0x490   : > { %v3007_v53 = vor.u32 %v3149_v56, %v3006_v25 }
 0x491   : > { %1954 = vmatmul.bf16.gmra.mxu0 %v1872_v27  ;;  %2237 = vmatpush.bf16.msrb.mxu1 %v3015_v23  ;;  %v3019_v27 = vor.u32 %v3150_v24, %v3016_v1 }
 0x493   : > { %2256 = vmatpush.bf16.msra.mxu2 %v3019_v27 }
 0x495   : > { %2238 = vmatpush.bf16.msrb.mxu1 %v3007_v53 }
 0x4d6   : > { %v1950_v3 = vpop.f32.mrf.mxu0 }
 0x4d7   : > { %v1951_v28 = vadd.f32 %v3319_v22, %v1950_v3  ;;  %v2998_v3 = vld [vmem:[#allocation11 + $0x30] sm:$0xf] }
 0x4d9   : > { %v1960_v31 = vadd.f32 %v1951_v28, %v617_v6  ;;  %v3008_v6 = vld [vmem:[#allocation11 + $0x48] sm:$0xf0]  ;;  %v3147_v28 = vld [vmem:[#allocation11 + $0x34] sm:$0xf0] }
 0x4db   : > { %1966 = vadd.xlane.f32.xlu0 %v1960_v31 }
 0x4de   : > { %v1952_v33 = vpop.f32.mrf.mxu0 }
 0x4df   : > { %v1953_v10 = vadd.f32 %v3319_v22, %v1952_v33  ;;  %v3000_v33 = vld [vmem:[#allocation11 + $0x38] sm:$0xf0] }
 0x4e1   : > { %v1961_v42 = vadd.f32 %v1953_v10, %v618_v5  ;;  %v3146_v5 = vld [vmem:[#allocation11 + $0x34] sm:$0xf] }
 0x4e3   : > { %1968 = vadd.xlane.f32.xlu2 %v1961_v42 }
 0x50e   : > { %v1955_v7 = vpop.f32.mrf.mxu0 }
 0x50f   : > { %v1956_v50 = vadd.f32 %v3319_v22, %v1955_v7  ;;  %v2990_v7 = vld [vmem:[#allocation11 + $0x20] sm:$0xf] }
 0x511   : > { %v1962_v14 = vadd.f32 %v1956_v50, %v619_v35  ;;  %v3145_v50 = vld [vmem:[#allocation11 + $0x24] sm:$0xf0] }
 0x512   : > { %v2991_v40 = vor.u32 %v3145_v50, %v2990_v7 }
 0x513   : > { %1970 = vadd.xlane.f32.xlu1 %v1962_v14 }
 0x516   : > { %v1957_v38 = vpop.f32.mrf.mxu0 }
 0x517   : > { %v1958_v36 = vadd.f32 %v3319_v22, %v1957_v38  ;;  %v3148_v22 = vld [vmem:[#allocation11 + $0x44] sm:$0xf] }
 0x518   : > { %v3144_v38 = vld [vmem:[#allocation11 + $0x24] sm:$0xf] }
 0x519   : > { %v1963_v37 = vadd.f32 %v1958_v36, %v620_v55  ;;  %v3003_v55 = vor.u32 %v3146_v5, %v3000_v33  ;;  %v2992_v36 = vld [vmem:[#allocation11 + $0x28] sm:$0xf0] }
 0x51a   : > { %v2995_v34 = vor.u32 %v3144_v38, %v2992_v36  ;;  %v4398_v38 = vld [vmem:[%s4518_s7] ss:$0 sm:$0xff] }
 0x51b   : > { %1972 = vadd.xlane.f32.xlu2 %v1963_v37 }
 0x54e   : > { %v1967_v54 = vpop.xlane.xlu0 %1966 }
 0x54f   : > { %v1981_v58 = vmul.f32 %v4355_v51, %v1967_v54  ;;  %v2984_v54 = vld [vmem:[#allocation11 + $0x18] sm:$0xf0] }
 0x551   : > { %v4358_v57 = vsub.f32 %v1960_v31, %v1981_v58  ;;  %v3011_v31 = vor.u32 %v3148_v22, %v3008_v6  ;;  %v4389_v6 = vld [vmem:[%s4517_s6] ss:$0 sm:$0xff] }
 0x553   : > { %v1989_v62 = vmul.f32 %v4358_v57, %v4358_v57  ;;  %2257 = vmatpush.bf16.msra.mxu2 %v3011_v31 }
 0x555   : > { %1993 = vadd.xlane.f32.xlu0 %v1989_v62  ;;  %v2983_v62 = vor.u32 %v3143_v2, %v2982_v43 }
 0x556   : > { %v1969_v63 = vpop.xlane.xlu2 %1968 }
 0x557   : > { %v1982_v0 = vmul.f32 %v4355_v51, %v1969_v63  ;;  %2258 = vmatpush.bf16.msra.mxu2 %v3003_v55 }
 0x559   : > { %v4363_v30 = vsub.f32 %v1961_v42, %v1982_v0  ;;  %v2999_v42 = vor.u32 %v3147_v28, %v2998_v3  ;;  %v2974_v0 = vld [vmem:[#allocation11] sm:$0xf] }
 0x55b   : > { %v1990_v61 = vmul.f32 %v4363_v30, %v4363_v30  ;;  %2239 = vmatpush.bf16.msrb.mxu1 %v2999_v42  ;;  %2259 = vmatpush.bf16.msra.mxu2 %v2995_v34  ;;  %v2009_v50 = vmul.f32 %v4389_v6, %v4363_v30 }
 0x55d   : > { %1995 = vadd.xlane.f32.xlu2 %v1990_v61  ;;  %v3141_v61 = vld [vmem:[#allocation11 + $0x4] sm:$0xf0] }
 0x55e   : > { %v2975_v12 = vor.u32 %v3141_v61, %v2974_v0 }
 0x55f   : > { %2240 = vmatpush.bf16.msrb.mxu1 %v2991_v40 }
 0x563   : > { %2241 = vmatpush.bf16.msrb.mxu1 %v2983_v62 }
 0x567   : > { %2242 = vmatpush.bf16.msrb.mxu1 %v2975_v12 }
 0x586   : > { %v1971_v39 = vpop.xlane.xlu1 %1970 }
 0x587   : > { %v1983_v19 = vmul.f32 %v4355_v51, %v1971_v39 }
 0x589   : > { %v4368_v15 = vsub.f32 %v1962_v14, %v1983_v19 }
 0x58b   : > { %v1991_v8 = vmul.f32 %v4368_v15, %v4368_v15 }
 0x58d   : > { %1997 = vadd.xlane.f32.xlu0 %v1991_v8  ;;  %v2987_v8 = vor.u32 %v3142_v48, %v2984_v54 }
 0x58e   : > { %v1973_v59 = vpop.xlane.xlu2 %1972 }
 0x58f   : > { %v1984_v9 = vmul.f32 %v4355_v51, %v1973_v59  ;;  %v3140_v59 = vld [vmem:[#allocation11 + $0x4] sm:$0xf]  ;;  %2260 = vmatpush.bf16.msra.mxu2 %v2987_v8 }
 0x591   : > { %v4373_v11 = vsub.f32 %v1963_v37, %v1984_v9  ;;  %v2976_v9 = vld [vmem:[#allocation11 + $0x8] sm:$0xf0] }
 0x592   : > { %v2979_v45 = vor.u32 %v3140_v59, %v2976_v9 }
 0x593   : > { %v1992_v44 = vmul.f32 %v4373_v11, %v4373_v11 }
 0x594   : > { %2261 = vmatpush.bf16.msra.mxu2 %v2979_v45 }
 0x595   : > { %1999 = vadd.xlane.f32.xlu1 %v1992_v44 }
 0x5c8   : > { %v1994_v4 = vpop.xlane.xlu0 %1993 }
 0x5c9   : > { %v4377_v21 = vmul.f32 0.007874016, %v1994_v4 }
 0x5cb   : > { %3391 = vrsqrt.f32 %v4377_v21  ;;  %vm2019_vm6 = vcmp.eq.f32.partialorder %v4377_v21, inf  ;;  %v2022_v41 = vand.u32 2147483648, %v4377_v21  ;;  %vm2021_vm7 = vcmp.eq.f32.partialorder %v4377_v21, 0.0 }
 0x5d0   : > { %v1996_v10 = vpop.xlane.xlu2 %1995 }
 0x5d1   : > { %v3392_v29 = vpop.eup %3391  ;;  %v2002_v35 = vmul.f32 0.007874016, %v1996_v10 }
 0x5d2   : > { %v2013_v14 = vmul.f32 %v3392_v29, %v4377_v21 }
 0x5d3   : > { %3393 = vrsqrt.f32 %v2002_v35  ;;  %vm2031_vm8 = vcmp.eq.f32.partialorder %v2002_v35, inf  ;;  %v2034_v20 = vand.u32 2147483648, %v2002_v35  ;;  %vm2033_vm9 = vcmp.eq.f32.partialorder %v2002_v35, 0.0 }
 0x5d4   : > { %v2014_v37 = vmul.f32 %v3392_v29, %v2013_v14 }
 0x5d6   : > { %v2015_v47 = vmul.f32 0.5, %v2014_v37 }
 0x5d8   : > { %v2016_v58 = vsub.f32 1.5, %v2015_v47 }
 0x5d9   : > { %v3394_v63 = vpop.eup %3393 }
 0x5da   : > { %v2017_v39 = vmul.f32 %v3392_v29, %v2016_v58  ;;  %v2025_v19 = vmul.f32 %v3394_v63, %v2002_v35  ;;  %v2008_v29 = vmul.f32 %v4389_v6, %v4358_v57 }
 0x5dc   : > { %v2018_v44 = vmul.f32 %v2017_v39, %v4377_v21  ;;  %v2026_v49 = vmul.f32 %v3394_v63, %v2025_v19 }
 0x5de   : > { %v2020_v26 = vsel %vm2019_vm6, %v4377_v21, %v2018_v44  ;;  %v2027_v46 = vmul.f32 0.5, %v2026_v49 }
 0x5df   : > { %v2023_v13 = vsel %vm2021_vm7, %v2022_v41, %v2020_v26  ;;  %v3163_v26 = vld [vmem:[#allocation13 + $0x38] sm:$0xff] }
 0x5e0   : > { %v2060_v32 = vadd.f32 1e-06, %v2023_v13  ;;  %v2028_v16 = vsub.f32 1.5, %v2027_v46  ;;  %v3171_v46 = vld [vmem:[#allocation13 + $0x78] sm:$0xff]  ;;  %2417 = vmatpush.bf16.msrb.mxu3 %v3163_v26  ;;  %v3162_v13 = vld [vmem:[#allocation13 + $0x30] sm:$0xff] }
 0x5e1   : > { %2436 = vmatpush.bf16.msra.mxu0 %v3171_v46 }
 0x5e2   : > { %3395 = vrcp.f32 %v2060_v32  ;;  %v2029_v60 = vmul.f32 %v3394_v63, %v2028_v16  ;;  %v2075_v27 = vand.u32 2147483648, %v2060_v32  ;;  %vm2069_vm11 = vweird.f32 %v2060_v32 }
 0x5e3   : > { %v2073_v53 = vand.u32 2147483647, %v2060_v32 }
 0x5e4   : > { %v2030_v17 = vmul.f32 %v2029_v60, %v2002_v35  ;;  %v2076_v31 = vor.u32 1.1754944e-38, %v2075_v27  ;;  %2418 = vmatpush.bf16.msrb.mxu3 %v3162_v13 }
 0x5e5   : > { %vm2074_vm13 = vcmp.eq.f32.partialorder %v2073_v53, 8.507059e+37 }
 0x5e6   : > { %v2032_v4 = vsel %vm2031_vm8, %v2002_v35, %v2030_v17 }
 0x5e7   : > { %v2035_v18 = vsel %vm2033_vm9, %v2034_v20, %v2032_v4  ;;  %v3161_v4 = vld [vmem:[#allocation13 + $0x28] sm:$0xff] }
 0x5e8   : > { %v3396_v52 = vpop.eup %3395  ;;  %v2061_v23 = vadd.f32 1e-06, %v2035_v18  ;;  %v3169_v18 = vld [vmem:[#allocation13 + $0x68] sm:$0xff]  ;;  %2419 = vmatpush.bf16.msrb.mxu3 %v3161_v4 }
 0x5e9   : > { %v2065_v24 = vmul.f32 %v3396_v52, %v2060_v32  ;;  %vm2070_vm10 = vweird.f32 %v3396_v52  ;;  %v3170_v32 = vld [vmem:[#allocation13 + $0x70] sm:$0xff] }
 0x5ea   : > { %3397 = vrcp.f32 %v2061_v23  ;;  %vm2071_vm12 = vmor %vm2069_vm11, %vm2070_vm10  ;;  %v2090_v5 = vand.u32 2147483648, %v2061_v23  ;;  %v2088_v10 = vand.u32 2147483647, %v2061_v23  ;;  %vm2084_vm15 = vweird.f32 %v2061_v23  ;;  %2437 = vmatpush.bf16.msra.mxu0 %v3170_v32 }
 0x5eb   : > { %v2066_v21 = vsub.f32 1.0, %v2065_v24 }
 0x5ec   : > { %v2091_v7 = vor.u32 1.1754944e-38, %v2090_v5  ;;  %vm2089_vm1 = vcmp.eq.f32.partialorder %v2088_v10, 8.507059e+37 }
 0x5ed   : > { %v2067_v1 = vmul.f32 %v3396_v52, %v2066_v21 }
 0x5ee   : > { %2438 = vmatpush.bf16.msra.mxu0 %v3169_v18 }
 0x5ef   : > { %v2068_v25 = vadd.f32 %v3396_v52, %v2067_v1  ;;  %v3160_v1 = vld [vmem:[#allocation13 + $0x20] sm:$0xff] }
 0x5f0   : > { %v3398_v56 = vpop.eup %3397  ;;  %2420 = vmatpush.bf16.msrb.mxu3 %v3160_v1 }
 0x5f1   : > { %v2080_v22 = vmul.f32 %v3398_v56, %v2061_v23  ;;  %v2072_v3 = vsel %vm2071_vm12, %v3396_v52, %v2068_v25  ;;  %vm2085_vm14 = vweird.f32 %v3398_v56 }
 0x5f2   : > { %v2077_v42 = vsel %vm2074_vm13, %v2076_v31, %v2072_v3  ;;  %vm2086_vm0 = vmor %vm2084_vm15, %vm2085_vm14 }
 0x5f3   : > { %v2081_v28 = vsub.f32 1.0, %v2080_v22  ;;  %v2078_v14 = vmul.f32 %v2077_v42, %v2008_v29 }
 0x5f5   : > { %v2082_v33 = vmul.f32 %v3398_v56, %v2081_v28  ;;  %v4401_v40 = vadd.f32 %v4398_v38, %v2078_v14  ;;  %v2011_v14 = vmul.f32 %v4389_v6, %v4373_v11  ;;  %v3158_v11 = vld [vmem:[#allocation13 + $0x10] sm:$0xff] }
 0x5f7   : > { %v2083_v35 = vadd.f32 %v3398_v56, %v2082_v33 }
 0x5f9   : > { %v2087_v55 = vsel %vm2086_vm0, %v3398_v56, %v2083_v35  ;;  %v2010_v35 = vmul.f32 %v4389_v6, %v4368_v15  ;;  %v3167_v6 = vld [vmem:[#allocation13 + $0x58] sm:$0xff] }
 0x5fa   : > { %v2092_v36 = vsel %vm2089_vm1, %v2091_v7, %v2087_v55 }
 0x5fb   : > { %v2093_v37 = vmul.f32 %v2092_v36, %v2009_v50 }
 0x5fd   : > { %v4404_v57 = vadd.f32 %v4398_v38, %v2093_v37 }
 0x5ff   : > { %v2131_v43 = vpack.c.bf16 %v4404_v57, %v4401_v40 }
 0x600   : > { %v1998_v30 = vpop.xlane.xlu0 %1997 }
 0x601   : > { %v2003_v2 = vmul.f32 0.007874016, %v1998_v30  ;;  %2243 = vmatmul.bf16.vlgmr.msrb.gmra.mxu1 %v2131_v43  ;;  %2262 = vmatmul.bf16.vlgmr.msra.gmra.mxu2 %v2131_v43 }
 0x603   : > { %3399 = vrsqrt.f32 %v2003_v2  ;;  %vm2043_vm2 = vcmp.eq.f32.partialorder %v2003_v2, inf  ;;  %v2046_v59 = vand.u32 2147483648, %v2003_v2  ;;  %vm2045_vm3 = vcmp.eq.f32.partialorder %v2003_v2, 0.0 }
 0x608   : > { %v2000_v47 = vpop.xlane.xlu1 %1999 }
 0x609   : > { %v3400_v34 = vpop.eup %3399  ;;  %v2004_v48 = vmul.f32 0.007874016, %v2000_v47  ;;  %v3159_v47 = vld [vmem:[#allocation13 + $0x18] sm:$0xff] }
 0x60a   : > { %v2037_v54 = vmul.f32 %v3400_v34, %v2003_v2  ;;  %2421 = vmatpush.bf16.msrb.mxu3 %v3159_v47 }
 0x60b   : > { %3401 = vrsqrt.f32 %v2004_v48  ;;  %vm2055_vm4 = vcmp.eq.f32.partialorder %v2004_v48, inf  ;;  %v2058_v60 = vand.u32 2147483648, %v2004_v48  ;;  %vm2057_vm5 = vcmp.eq.f32.partialorder %v2004_v48, 0.0 }
 0x60c   : > { %v2038_v58 = vmul.f32 %v3400_v34, %v2037_v54  ;;  %v3166_v54 = vld [vmem:[#allocation13 + $0x50] sm:$0xff] }
 0x60e   : > { %v2039_v62 = vmul.f32 0.5, %v2038_v58  ;;  %2422 = vmatpush.bf16.msrb.mxu3 %v3158_v11  ;;  %v3156_v58 = vld [vmem:[#allocation13] sm:$0xff] }
 0x610   : > { %v2040_v63 = vsub.f32 1.5, %v2039_v62  ;;  %v3164_v62 = vld [vmem:[#allocation13 + $0x40] sm:$0xff] }
 0x611   : > { %v3402_v0 = vpop.eup %3401 }
 0x612   : > { %v2041_v61 = vmul.f32 %v3400_v34, %v2040_v63  ;;  %v2049_v39 = vmul.f32 %v3402_v0, %v2004_v48  ;;  %v3168_v34 = vld [vmem:[#allocation13 + $0x60] sm:$0xff]  ;;  %v2149_v63 = vld [vmem:[%s4520_s9] sm:$0x3] }
 0x613   : > { %2439 = vmatpush.bf16.msra.mxu0 %v3168_v34 }
 0x614   : > { %v2042_v19 = vmul.f32 %v2041_v61, %v2003_v2  ;;  %v2050_v8 = vmul.f32 %v3402_v0, %v2049_v39  ;;  %v2151_v61 = vperm.slane %v2149_v63, 0 }
 0x616   : > { %v2051_v9 = vmul.f32 0.5, %v2050_v8  ;;  %v2044_v44 = vsel %vm2043_vm2, %v2003_v2, %v2042_v19 }
 0x617   : > { %v2047_v49 = vsel %vm2045_vm3, %v2046_v59, %v2044_v44  ;;  %2440 = vmatpush.bf16.msra.mxu0 %v3167_v6  ;;  %v2152_v59 = vperm.slane %v2149_v63, 1 }
 0x618   : > { %v2052_v12 = vsub.f32 1.5, %v2051_v9  ;;  %v2062_v41 = vadd.f32 1e-06, %v2047_v49 }
 0x61a   : > { %v2053_v45 = vmul.f32 %v3402_v0, %v2052_v12  ;;  %3403 = vrcp.f32 %v2062_v41  ;;  %v2105_v53 = vand.u32 2147483648, %v2062_v41  ;;  %vm2099_vm7 = vweird.f32 %v2062_v41 }
 0x61b   : > { %v2103_v22 = vand.u32 2147483647, %v2062_v41  ;;  %2441 = vmatpush.bf16.msra.mxu0 %v3166_v54 }
 0x61c   : > { %v2054_v16 = vmul.f32 %v2053_v45, %v2004_v48  ;;  %v2106_v5 = vor.u32 1.1754944e-38, %v2105_v53  ;;  %v3322_v53 = vld [vmem:[%s4522_s11] ss:$0 sm:$0xff] }
 0x61d   : > { %vm2104_vm9 = vcmp.eq.f32.partialorder %v2103_v22, 8.507059e+37 }
 0x61e   : > { %v2056_v17 = vsel %vm2055_vm4, %v2004_v48, %v2054_v16  ;;  %v3157_v48 = vld [vmem:[#allocation13 + $0x8] sm:$0xff] }
 0x61f   : > { %v2059_v20 = vsel %vm2057_vm5, %v2058_v60, %v2056_v17  ;;  %2423 = vmatpush.bf16.msrb.mxu3 %v3157_v48 }
 0x620   : > { %v3404_v52 = vpop.eup %3403  ;;  %v2063_v23 = vadd.f32 1e-06, %v2059_v20 }
 0x621   : > { %v2095_v24 = vmul.f32 %v3404_v52, %v2062_v41  ;;  %vm2100_vm6 = vweird.f32 %v3404_v52 }
 0x622   : > { %3405 = vrcp.f32 %v2063_v23  ;;  %vm2101_vm8 = vmor %vm2099_vm7, %vm2100_vm6  ;;  %v2120_v33 = vand.u32 2147483648, %v2063_v23  ;;  %v2118_v42 = vand.u32 2147483647, %v2063_v23  ;;  %vm2114_vm11 = vweird.f32 %v2063_v23 }
 0x623   : > { %v2096_v21 = vsub.f32 1.0, %v2095_v24  ;;  %2424 = vmatpush.bf16.msrb.mxu3 %v3156_v58 }
 0x624   : > { %v2121_v50 = vor.u32 1.1754944e-38, %v2120_v33  ;;  %vm2119_vm13 = vcmp.eq.f32.partialorder %v2118_v42, 8.507059e+37 }
 0x625   : > { %v2097_v25 = vmul.f32 %v3404_v52, %v2096_v21 }
 0x627   : > { %v2098_v56 = vadd.f32 %v3404_v52, %v2097_v25 }
 0x628   : > { %v3406_v27 = vpop.eup %3405 }
 0x629   : > { %v2110_v3 = vmul.f32 %v3406_v27, %v2063_v23  ;;  %v2102_v28 = vsel %vm2101_vm8, %v3404_v52, %v2098_v56  ;;  %vm2115_vm10 = vweird.f32 %v3406_v27 }
 0x62a   : > { %v2107_v29 = vsel %vm2104_vm9, %v2106_v5, %v2102_v28  ;;  %vm2116_vm12 = vmor %vm2114_vm11, %vm2115_vm10 }
 0x62b   : > { %v2111_v31 = vsub.f32 1.0, %v2110_v3  ;;  %v2108_v55 = vmul.f32 %v2107_v29, %v2010_v35 }
 0x62d   : > { %v2112_v10 = vmul.f32 %v3406_v27, %v2111_v31  ;;  %v4413_v30 = vadd.f32 %v4398_v38, %v2108_v55 }
 0x62f   : > { %v2113_v7 = vadd.f32 %v3406_v27, %v2112_v10 }
 0x631   : > { %v2117_v36 = vsel %vm2116_vm12, %v3406_v27, %v2113_v7 }
 0x632   : > { %v2122_v37 = vsel %vm2119_vm13, %v2121_v50, %v2117_v36 }
 0x633   : > { %v2123_v43 = vmul.f32 %v2122_v37, %v2011_v14 }
 0x635   : > { %v4416_v2 = vadd.f32 %v4398_v38, %v2123_v43  ;;  %v3165_v38 = vld [vmem:[#allocation13 + $0x48] sm:$0xff] }
 0x636   : > { %2442 = vmatpush.bf16.msra.mxu0 %v3165_v38 }
 0x637   : > { %v2132_v15 = vpack.c.bf16 %v4416_v2, %v4413_v30 }
 0x639   : > { %2248 = vmatmul.bf16.gmra.mxu1 %v2132_v15  ;;  %2267 = vmatmul.bf16.gmra.mxu2 %v2132_v15 }
 0x63a   : > { %2443 = vmatpush.bf16.msra.mxu0 %v3164_v62 }
 0x67e   : > { %v2244_v0 = vpop.f32.mrf.mxu1 }
 0x67f   : > { %v2245_v19 = vadd.f32 %v2244_v0, %v2151_v61 }
 0x681   : > { %v2273_v44 = vmax.f32 %v2245_v19, 0.0 }
 0x684   : > { %v2263_v39 = vpop.f32.mrf.mxu2 }
 0x685   : > { %v2264_v12 = vadd.f32 %v2263_v39, %v2152_v59  ;;  %v4449_v39 = vld [vmem:[%s4561_s21] ss:$0 sm:$0xff] }
 0x686   : > { %v2246_v8 = vpop.f32.mrf.mxu1 }
 0x687   : > { %v2247_v9 = vadd.f32 %v2246_v8, %v2151_v61  ;;  %v2274_v45 = vmax.f32 %v2264_v12, 0.0 }
 0x689   : > { %v2275_v49 = vmax.f32 %v2247_v9, 0.0 }
 0x68b   : > { %v2281_v41 = vpack.c.bf16 %v2275_v49, %v2273_v44 }
 0x68c   : > { %v2265_v26 = vpop.f32.mrf.mxu2 }
 0x68d   : > { %v2266_v46 = vadd.f32 %v2265_v26, %v2152_v59  ;;  %2425 = vmatmul.bf16.vlgmr.msrb.gmra.mxu3 %v2281_v41 }
 0x68f   : > { %v2276_v13 = vmax.f32 %v2266_v46, 0.0 }
 0x691   : > { %v2282_v32 = vpack.c.bf16 %v2276_v13, %v2274_v45 }
 0x693   : > { %2444 = vmatmul.bf16.vlgmr.msra.gmra.mxu0 %v2282_v32 }
 0x6b6   : > { %v2249_v16 = vpop.f32.mrf.mxu1 }
 0x6b7   : > { %v2250_v17 = vadd.f32 %v2249_v16, %v2151_v61 }
 0x6b9   : > { %v2277_v18 = vmax.f32 %v2250_v17, 0.0 }
 0x6bc   : > { %v2268_v60 = vpop.f32.mrf.mxu2 }
 0x6bd   : > { %v2269_v23 = vadd.f32 %v2268_v60, %v2152_v59 }
 0x6be   : > { %v2251_v20 = vpop.f32.mrf.mxu1 }
 0x6bf   : > { %v2252_v4 = vadd.f32 %v2251_v20, %v2151_v61  ;;  %v2278_v25 = vmax.f32 %v2269_v23, 0.0 }
 0x6c1   : > { %v2279_v52 = vmax.f32 %v2252_v4, 0.0 }
 0x6c3   : > { %v2283_v24 = vpack.c.bf16 %v2279_v52, %v2277_v18 }
 0x6c4   : > { %v2270_v21 = vpop.f32.mrf.mxu2 }
 0x6c5   : > { %v2271_v1 = vadd.f32 %v2270_v21, %v2152_v59  ;;  %2430 = vmatmul.bf16.gmra.mxu3 %v2283_v24 }
 0x6c7   : > { %v2280_v56 = vmax.f32 %v2271_v1, 0.0 }
 0x6c9   : > { %v2284_v27 = vpack.c.bf16 %v2280_v56, %v2278_v25 }
 0x6cb   : > { %2449 = vmatmul.bf16.gmra.mxu0 %v2284_v27 }
 0x710   : > { %v2426_v22 = vpop.f32.mrf.mxu3  ;;  %v2445_v3 = vpop.f32.mrf.mxu0 }
 0x711   : > { %v2427_v28 = vadd.f32 %v3322_v53, %v2426_v22 }
 0x713   : > { %v2446_v31 = vadd.f32 %v2445_v3, %v2427_v28 }
 0x715   : > { %v2455_v5 = vadd.f32 %v2446_v31, %v4401_v40 }
 0x717   : > { %2461 = vadd.xlane.f32.xlu2 %v2455_v5 }
 0x718   : > { %v2428_v33 = vpop.f32.mrf.mxu3  ;;  %v2447_v42 = vpop.f32.mrf.mxu0 }
 0x719   : > { %v2429_v10 = vadd.f32 %v3322_v53, %v2428_v33 }
 0x71b   : > { %v2448_v29 = vadd.f32 %v2447_v42, %v2429_v10 }
 0x71d   : > { %v2456_v35 = vadd.f32 %v2448_v29, %v4404_v57 }
 0x71f   : > { %2463 = vadd.xlane.f32.xlu0 %v2456_v35 }
 0x748   : > { %v2431_v7 = vpop.f32.mrf.mxu3  ;;  %v2450_v50 = vpop.f32.mrf.mxu0 }
 0x749   : > { %v2432_v14 = vadd.f32 %v3322_v53, %v2431_v7 }
 0x74b   : > { %v2451_v55 = vadd.f32 %v2450_v50, %v2432_v14  ;;  %v4460_v14 = vld [vmem:[%s4562_s13] ss:$0 sm:$0xff] }
 0x74d   : > { %v2457_v36 = vadd.f32 %v2451_v55, %v4413_v30 }
 0x74f   : > { %2465 = vadd.xlane.f32.xlu1 %v2457_v36 }
 0x750   : > { %v2433_v37 = vpop.f32.mrf.mxu3  ;;  %v2452_v15 = vpop.f32.mrf.mxu0 }
 0x751   : > { %v2434_v43 = vadd.f32 %v3322_v53, %v2433_v37 }
 0x753   : > { %v2453_v47 = vadd.f32 %v2452_v15, %v2434_v43 }
 0x755   : > { %v2458_v40 = vadd.f32 %v2453_v47, %v4416_v2 }
 0x757   : > { %2467 = vadd.xlane.f32.xlu2 %v2458_v40 }
 0x78a   : > { %v2462_v34 = vpop.xlane.xlu2 %2461 }
 0x78b   : > { %v2469_v11 = vmul.f32 %v2462_v34, %v4355_v51 }
 0x78d   : > { %v4431_v6 = vsub.f32 %v2455_v5, %v2469_v11 }
 0x78f   : > { %v2477_v57 = vmul.f32 %v4431_v6, %v4431_v6 }
 0x791   : > { %2481 = vadd.xlane.f32.xlu0 %v2477_v57 }
 0x792   : > { %v2464_v48 = vpop.xlane.xlu0 %2463 }
 0x793   : > { %v2470_v30 = vmul.f32 %v2464_v48, %v4355_v51 }
 0x795   : > { %v4436_v54 = vsub.f32 %v2456_v35, %v2470_v30  ;;  %v2496_v35 = vmul.f32 %v4449_v39, %v4431_v6 }
 0x797   : > { %v2478_v58 = vmul.f32 %v4436_v54, %v4436_v54  ;;  %v2497_v6 = vmul.f32 %v4449_v39, %v4436_v54 }
 0x799   : > { %2483 = vadd.xlane.f32.xlu1 %v2478_v58 }
 0x7c2   : > { %v2466_v2 = vpop.xlane.xlu1 %2465 }
 0x7c3   : > { %v2471_v38 = vmul.f32 %v2466_v2, %v4355_v51 }
 0x7c5   : > { %v4441_v62 = vsub.f32 %v2457_v36, %v2471_v38 }
 0x7c7   : > { %v2479_v63 = vmul.f32 %v4441_v62, %v4441_v62 }
 0x7c9   : > { %2485 = vadd.xlane.f32.xlu2 %v2479_v63 }
 0x7ca   : > { %v2468_v0 = vpop.xlane.xlu2 %2467 }
 0x7cb   : > { %v2472_v61 = vmul.f32 %v2468_v0, %v4355_v51 }
 0x7cd   : > { %v2476_v19 = vsub.f32 %v2458_v40, %v2472_v61 }
 0x7cf   : > { %v4452_v8 = vmul.f32 %v4449_v39, %v2476_v19  ;;  %v2480_v59 = vmul.f32 %v2476_v19, %v2476_v19 }
 0x7d1   : > { %2487 = vadd.xlane.f32.xlu0 %v2480_v59 }
 0x804   : > { %v2482_v9 = vpop.xlane.xlu0 %2481 }
 0x805   : > { %v2489_v44 = vmul.f32 0.007874016, %v2482_v9 }
 0x807   : > { %3407 = vrsqrt.f32 %v2489_v44  ;;  %vm2507_vm14 = vcmp.eq.f32.partialorder %v2489_v44, inf  ;;  %v2510_v20 = vand.u32 2147483648, %v2489_v44  ;;  %vm2509_vm15 = vcmp.eq.f32.partialorder %v2489_v44, 0.0 }
 0x80c   : > { %v2484_v49 = vpop.xlane.xlu1 %2483 }
 0x80d   : > { %v3408_v12 = vpop.eup %3407  ;;  %v2490_v41 = vmul.f32 0.007874016, %v2484_v49 }
 0x80e   : > { %v2501_v26 = vmul.f32 %v3408_v12, %v2489_v44 }
 0x80f   : > { %3409 = vrsqrt.f32 %v2490_v41  ;;  %vm2519_vm0 = vcmp.eq.f32.partialorder %v2490_v41, inf  ;;  %v2522_v25 = vand.u32 2147483648, %v2490_v41  ;;  %vm2521_vm1 = vcmp.eq.f32.partialorder %v2490_v41, 0.0 }
 0x810   : > { %v2502_v51 = vmul.f32 %v3408_v12, %v2501_v26 }
 0x812   : > { %v2503_v46 = vmul.f32 0.5, %v2502_v51 }
 0x814   : > { %v2504_v45 = vsub.f32 1.5, %v2503_v46 }
 0x815   : > { %v3410_v13 = vpop.eup %3409 }
 0x816   : > { %v2505_v32 = vmul.f32 %v3408_v12, %v2504_v45  ;;  %v2513_v16 = vmul.f32 %v3410_v13, %v2490_v41 }
 0x818   : > { %v2506_v60 = vmul.f32 %v2505_v32, %v2489_v44  ;;  %v2514_v17 = vmul.f32 %v3410_v13, %v2513_v16 }
 0x81a   : > { %v2508_v4 = vsel %vm2507_vm14, %v2489_v44, %v2506_v60  ;;  %v2515_v18 = vmul.f32 0.5, %v2514_v17 }
 0x81b   : > { %v2511_v52 = vsel %vm2509_vm15, %v2510_v20, %v2508_v4 }
 0x81c   : > { %v2548_v23 = vadd.f32 1e-06, %v2511_v52  ;;  %v2516_v24 = vsub.f32 1.5, %v2515_v18 }
 0x81e   : > { %3411 = vrcp.f32 %v2548_v23  ;;  %v2517_v21 = vmul.f32 %v3410_v13, %v2516_v24  ;;  %v2563_v31 = vand.u32 2147483648, %v2548_v23  ;;  %v2561_v33 = vand.u32 2147483647, %v2548_v23 }
 0x81f   : > { %vm2557_vm3 = vweird.f32 %v2548_v23 }
 0x820   : > { %v2518_v1 = vmul.f32 %v2517_v21, %v2490_v41  ;;  %v2564_v29 = vor.u32 1.1754944e-38, %v2563_v31  ;;  %vm2562_vm5 = vcmp.eq.f32.partialorder %v2561_v33, 8.507059e+37 }
 0x822   : > { %v2520_v56 = vsel %vm2519_vm0, %v2490_v41, %v2518_v1 }
 0x823   : > { %v2523_v27 = vsel %vm2521_vm1, %v2522_v25, %v2520_v56 }
 0x824   : > { %v3412_v53 = vpop.eup %3411  ;;  %v2549_v22 = vadd.f32 1e-06, %v2523_v27 }
 0x825   : > { %v2553_v3 = vmul.f32 %v3412_v53, %v2548_v23  ;;  %vm2558_vm2 = vweird.f32 %v3412_v53 }
 0x826   : > { %3413 = vrcp.f32 %v2549_v22  ;;  %vm2559_vm4 = vmor %vm2557_vm3, %vm2558_vm2  ;;  %v2578_v43 = vand.u32 2147483648, %v2549_v22  ;;  %v2576_v47 = vand.u32 2147483647, %v2549_v22  ;;  %vm2572_vm7 = vweird.f32 %v2549_v22 }
 0x827   : > { %v2554_v28 = vsub.f32 1.0, %v2553_v3  ;;  %v2498_v3 = vmul.f32 %v4449_v39, %v4441_v62 }
 0x828   : > { %v2579_v11 = vor.u32 1.1754944e-38, %v2578_v43  ;;  %vm2577_vm9 = vcmp.eq.f32.partialorder %v2576_v47, 8.507059e+37 }
 0x829   : > { %v2555_v5 = vmul.f32 %v3412_v53, %v2554_v28 }
 0x82b   : > { %v2556_v10 = vadd.f32 %v3412_v53, %v2555_v5 }
 0x82c   : > { %v3414_v42 = vpop.eup %3413 }
 0x82d   : > { %v2568_v7 = vmul.f32 %v3414_v42, %v2549_v22  ;;  %v2560_v50 = vsel %vm2559_vm4, %v3412_v53, %v2556_v10  ;;  %vm2573_vm6 = vweird.f32 %v3414_v42 }
 0x82e   : > { %v2565_v55 = vsel %vm2562_vm5, %v2564_v29, %v2560_v50  ;;  %vm2574_vm8 = vmor %vm2572_vm7, %vm2573_vm6 }
 0x82f   : > { %v2569_v36 = vsub.f32 1.0, %v2568_v7  ;;  %v2566_v37 = vmul.f32 %v2565_v55, %v2496_v35 }
 0x831   : > { %v2570_v15 = vmul.f32 %v3414_v42, %v2569_v36  ;;  %v2615_v40 = vadd.f32 %v4460_v14, %v2566_v37 }
 0x833   : > { %v2571_v34 = vadd.f32 %v3414_v42, %v2570_v15  ;;  %2619 = vst [vmem:[%s4463_s15] sm:$0xff] %v2615_v40 }
 0x835   : > { %v2575_v57 = vsel %vm2574_vm8, %v3414_v42, %v2571_v34 }
 0x836   : > { %v2580_v48 = vsel %vm2577_vm9, %v2579_v11, %v2575_v57 }
 0x837   : > { %v2581_v30 = vmul.f32 %v2580_v48, %v2497_v6 }
 0x839   : > { %v2616_v58 = vadd.f32 %v4460_v14, %v2581_v30 }
 0x83b   : > { %2620 = vst [vmem:[%s4463_s15 + $0x8] sm:$0xff] %v2616_v58 }
 0x83c   : > { %v2486_v2 = vpop.xlane.xlu2 %2485 }
 0x83d   : > { %v2491_v38 = vmul.f32 0.007874016, %v2486_v2 }
 0x83f   : > { %3415 = vrsqrt.f32 %v2491_v38  ;;  %vm2531_vm10 = vcmp.eq.f32.partialorder %v2491_v38, inf  ;;  %v2534_v51 = vand.u32 2147483648, %v2491_v38  ;;  %vm2533_vm11 = vcmp.eq.f32.partialorder %v2491_v38, 0.0 }
 0x844   : > { %v2488_v63 = vpop.xlane.xlu0 %2487 }
 0x845   : > { %v3416_v0 = vpop.eup %3415  ;;  %v2492_v61 = vmul.f32 0.007874016, %v2488_v63 }
 0x846   : > { %v2525_v19 = vmul.f32 %v3416_v0, %v2491_v38 }
 0x847   : > { %3417 = vrsqrt.f32 %v2492_v61  ;;  %vm2543_vm12 = vcmp.eq.f32.partialorder %v2492_v61, inf  ;;  %v2546_v20 = vand.u32 2147483648, %v2492_v61  ;;  %vm2545_vm13 = vcmp.eq.f32.partialorder %v2492_v61, 0.0 }
 0x848   : > { %v2526_v59 = vmul.f32 %v3416_v0, %v2525_v19 }
 0x84a   : > { %v2527_v9 = vmul.f32 0.5, %v2526_v59 }
 0x84c   : > { %v2528_v44 = vsub.f32 1.5, %v2527_v9 }
 0x84d   : > { %v3418_v49 = vpop.eup %3417 }
 0x84e   : > { %v2529_v54 = vmul.f32 %v3416_v0, %v2528_v44  ;;  %v2537_v12 = vmul.f32 %v3418_v49, %v2492_v61 }
 0x850   : > { %v2530_v41 = vmul.f32 %v2529_v54, %v2491_v38  ;;  %v2538_v26 = vmul.f32 %v3418_v49, %v2537_v12 }
 0x852   : > { %v2532_v46 = vsel %vm2531_vm10, %v2491_v38, %v2530_v41  ;;  %v2539_v45 = vmul.f32 0.5, %v2538_v26 }
 0x853   : > { %v2535_v13 = vsel %vm2533_vm11, %v2534_v51, %v2532_v46 }
 0x854   : > { %v2550_v32 = vadd.f32 1e-06, %v2535_v13  ;;  %v2540_v16 = vsub.f32 1.5, %v2539_v45 }
 0x856   : > { %3419 = vrcp.f32 %v2550_v32  ;;  %v2541_v60 = vmul.f32 %v3418_v49, %v2540_v16  ;;  %v2593_v1 = vand.u32 2147483648, %v2550_v32  ;;  %v2591_v56 = vand.u32 2147483647, %v2550_v32 }
 0x857   : > { %vm2587_vm15 = vweird.f32 %v2550_v32 }
 0x858   : > { %v2542_v17 = vmul.f32 %v2541_v60, %v2492_v61  ;;  %v2594_v22 = vor.u32 1.1754944e-38, %v2593_v1  ;;  %vm2592_vm1 = vcmp.eq.f32.partialorder %v2591_v56, 8.507059e+37 }
 0x85a   : > { %v2544_v4 = vsel %vm2543_vm12, %v2492_v61, %v2542_v17 }
 0x85b   : > { %v2547_v18 = vsel %vm2545_vm13, %v2546_v20, %v2544_v4 }
 0x85c   : > { %v3420_v52 = vpop.eup %3419  ;;  %v2551_v23 = vadd.f32 1e-06, %v2547_v18 }
 0x85d   : > { %v2583_v24 = vmul.f32 %v3420_v52, %v2550_v32  ;;  %vm2588_vm14 = vweird.f32 %v3420_v52 }
 0x85e   : > { %3421 = vrcp.f32 %v2551_v23  ;;  %vm2589_vm0 = vmor %vm2587_vm15, %vm2588_vm14  ;;  %v2608_v42 = vand.u32 2147483648, %v2551_v23  ;;  %v2606_v35 = vand.u32 2147483647, %v2551_v23  ;;  %vm2602_vm3 = vweird.f32 %v2551_v23 }
 0x85f   : > { %v2584_v21 = vsub.f32 1.0, %v2583_v24 }
 0x860   : > { %v2609_v39 = vor.u32 1.1754944e-38, %v2608_v42  ;;  %vm2607_vm5 = vcmp.eq.f32.partialorder %v2606_v35, 8.507059e+37 }
 0x861   : > { %v2585_v25 = vmul.f32 %v3420_v52, %v2584_v21 }
 0x863   : > { %v2586_v27 = vadd.f32 %v3420_v52, %v2585_v25 }
 0x864   : > { %v3422_v53 = vpop.eup %3421 }
 0x865   : > { %v2598_v28 = vmul.f32 %v3422_v53, %v2551_v23  ;;  %v2590_v31 = vsel %vm2589_vm0, %v3420_v52, %v2586_v27  ;;  %vm2603_vm2 = vweird.f32 %v3422_v53 }
 0x866   : > { %v2595_v5 = vsel %vm2592_vm1, %v2594_v22, %v2590_v31  ;;  %vm2604_vm4 = vmor %vm2602_vm3, %vm2603_vm2 }
 0x867   : > { %v2599_v33 = vsub.f32 1.0, %v2598_v28  ;;  %v2596_v10 = vmul.f32 %v2595_v5, %v2498_v3 }
 0x869   : > { %v2600_v29 = vmul.f32 %v3422_v53, %v2599_v33  ;;  %v2617_v7 = vadd.f32 %v4460_v14, %v2596_v10 }
 0x86b   : > { %v2601_v62 = vadd.f32 %v3422_v53, %v2600_v29  ;;  %2621 = vst [vmem:[%s4463_s15 + $0x10] sm:$0xff] %v2617_v7 }
 0x86d   : > { %v2605_v50 = vsel %vm2604_vm4, %v3422_v53, %v2601_v62 }
 0x86e   : > { %v2610_v55 = vsel %vm2607_vm5, %v2609_v39, %v2605_v50 }
 0x86f   : > { %v2611_v36 = vmul.f32 %v2610_v55, %v4452_v8 }
 0x871   : > { %v2618_v37 = vadd.f32 %v4460_v14, %v2611_v36 }
 0x873   : > { %2622 = vst [vmem:[%s4463_s15 + $0x18] sm:$0xff] %v2618_v37 }
 0x874   : > { %3660 = shalt.err (!%p3657_p8)
}
 0x875   : > { %s3734_s12 = smov 128   ;;  %s3735_s24 = smov 8  }
 0x876   : > { %3197 = dma.vmem_to_hbm [thread:$0]  (%p3907_p0), %s2637_s20, 512, %s2639_s10, %s2624_s22, %s3734_s12, %s3734_s12, %s3735_s24  }
 0x877 PF: > { %s4564_s3 = sld [smem:[#allocation21_spill]]  ;;  %p4566_p10 = scmp.ge.s32.totalorder %s3715_s16, 2 }
 0x879   : > { %p3223_p11 = pnand %p4566_p10, %p3915_p6 }
 0x87b   : > { %p3224_p12 = pneg %p3223_p11 }
 0x87d   : > { %s2653_s13 = sand.u32 1, %s4564_s3  }
 0x87e   : > { %s2654_s15 = scalar_lea.sflag [#allocation4], %s2653_s13 }
 0x87f   : > { %3698 = dma.done.wait (%p3224_p12), %s2654_s15, 512  }
 0x880   : > { %3700 = vsyncadd (%p3224_p12), %s2654_s15, 4294966784  ;;  %s4567_s16 = sld [smem:[#allocation23_spill]]  ;;  %s4570_s29 = smov %s3707_s30 }
 0x881   : > { %s4568_s25 = sld [smem:[#allocation22_spill]] }
 0x882   : > { %s4569_s15 = sld [smem:[#allocation24_spill]] }
 0x886   : > { %p32_p2 = scmp.ge.s32.totalorder %s4567_s16, 4  }
 0x887   : > { %s4571_s30 = smov %s4568_s25 }
 0x888   :  { %34 = sbr.rel (!%p32_p2) target bundleno = 18 (0x12), region = 154 }
 0x88d   :  { %2660 = vsyncpa [#allocation3], 1 }
 0x88e   :  { %2662 = vsyncpa [#allocation3 + $0x1], 1 }
 0x88f   :  { %2663 = vsyncpa [#allocation6], 1 }
 0x890   :  { %2665 = vsyncpa [#allocation6 + $0x1], 1 }
 0x891   :  { %2666 = vsyncpa [#allocation9], 1 }
 0x892   :  { %2667 = vsyncpa [#allocation12], 1 }
 0x893   :  { %2668 = vsyncpa [#allocation4], 1 }
 0x894   :  { %2670 = vsyncpa [#allocation4 + $0x1], 1 }

</bundles_post_ra>
